<compile_context>
chip_gen: v5e
topology: v5e:2x2
jax: 0.10.0
libtpu: 0.0.40
codegen_flags: <defaults>
</compile_context>

<pallas_src>
import functools
import math

import jax
import jax.numpy as jnp
from jax.experimental import pallas as pl
from jax.experimental.pallas import tpu as pltpu


def _round_up(x, m):
    return (x + m - 1) // m * m


def _memnet_kernel(maxlen_ref,                       # SMEM scalar prefetch: (1,) int32
                   mem_ref, x0_ref,
                   wk_ref, bk_ref, wq_ref, bq_ref, attw_ref,
                   wp_ref, bp_ref, wx_ref, bx_ref, wd_ref, bd_ref,
                   out_ref, *, hops: int):
    f32 = jnp.float32
    tb, lm, e_pad = mem_ref.shape
    h_pad = wk_ref.shape[1]

    mem = mem_ref[...]                                # (TB, Lm, E)  MXU operand, native dtype
    wk, bk = wk_ref[...], bk_ref[...].astype(f32)
    wq, bq = wq_ref[...], bq_ref[...].astype(f32)
    attw = attw_ref[...].astype(f32)                  # (2, H): row0 = k-half, row1 = q-half
    wp, bp = wp_ref[...], bp_ref[...].astype(f32)
    wx, bx = wx_ref[...], bx_ref[...].astype(f32)
    wd, bd = wd_ref[...], bd_ref[...].astype(f32)

    # K-side projection is independent of x -> hoist out of the hops loop.
    kx = jnp.dot(mem.reshape(tb * lm, e_pad), wk,
                 preferred_element_type=f32) + bk     # (TB*Lm, H)
    kx = kx.reshape(tb, lm, h_pad)                    # (TB, Lm, H)

    att_k = attw[0:1, :]                              # (1, H)
    att_q = attw[1:2, :]                              # (1, H)
    # Lane-major scores: Lm on the lane axis -> softmax max/sum are dense lane reduces.
    sk = jnp.sum(kx * att_k[:, None, :], axis=-1)     # (TB, Lm)

    # Valid positions = SqueezeEmbedding truncation to the longest sequence in the batch.
    pos = jax.lax.broadcasted_iota(jnp.int32, (tb, lm), 1)
    valid = pos < maxlen_ref[0]                       # (TB, Lm)

    x = x0_ref[...].astype(f32)                       # (TB, E) pre-reduced aspect mean

    for _ in range(hops):
        x = jnp.dot(x, wx, preferred_element_type=f32) + bx        # x_linear
        qx = jnp.dot(x, wq, preferred_element_type=f32) + bq       # (TB, H)
        sq = jnp.sum(qx * att_q, axis=-1, keepdims=True)           # (TB, 1)
        s = jnp.where(valid, jnp.tanh(sk + sq), -1e30)             # (TB, Lm)
        m = jnp.max(s, axis=-1, keepdims=True)
        e = jnp.where(valid, jnp.exp(s - m), 0.0)
        attn = e * pl.reciprocal(jnp.sum(e, axis=-1, keepdims=True), approx=True)
        # Batched MXU weighted sum of the memory rows (flash-attention pattern).
        ctx = jnp.einsum('bql,blh->bqh', attn.reshape(tb, 1, lm), kx,
                         preferred_element_type=f32)[:, 0, :]       # (TB, H)
        out = jnp.dot(ctx, wp, preferred_element_type=f32) + bp     # (TB, E)
        x = out + x                                                 # residual

    logits = jnp.dot(x, wd, preferred_element_type=f32) + bd        # (TB, P_pad)
    out_ref[...] = logits.astype(out_ref.dtype)


def memnet_forward(text_indices, aspect_indices, params, hops):
    emb = params["embedding"]                        # (V, E)
    E = emb.shape[1]
    B, Lt = text_indices.shape
    H = params["w_k"].shape[1]
    P = params["w_dense"].shape[1]

    # Lane / sublane dense padded sizes.
    E_pad = _round_up(E, 128)
    H_pad = _round_up(H, 128)
    P_pad = _round_up(P, 128)
    Lm = _round_up(Lt, 8)
    B8 = _round_up(B, 8)
    TB = min(B8, 64)                                 # batch rows per grid step
    B_pad = _round_up(B8, TB)

    memory_len = jnp.sum(text_indices != 0, axis=-1)                    # (B,)
    aspect_len = jnp.sum(aspect_indices != 0, axis=-1).astype(jnp.float32)
    # Longest sequence in the batch, kept on device (scalar prefetch -> no host sync
    # and no recompile per distinct batch max length).
    max_len = jnp.max(memory_len).astype(jnp.int32).reshape(1)

    # TODO(synk): nn.Embedding gather is a data-dependent gather; done in plain JAX.
    memory = emb[text_indices]                       # (B, Lt, E)
    aspect_emb = emb[aspect_indices]                 # (B, La, E)

    # SqueezeEmbedding: zero the padded tail of each row; instead of host-side
    # truncation to the batch max, the kernel masks the softmax at max_len
    # (identical result, fully traceable).
    pos = jnp.arange(Lt, dtype=memory_len.dtype)[None, :]
    memory = memory * (pos < memory_len[:, None])[:, :, None].astype(memory.dtype)

    # Aspect mean pre-reduced in the wrapper (cuts La x HBM traffic into the kernel).
    # NOTE: an all-padding aspect row would divide by zero (same as the reference).
    x0 = jnp.sum(aspect_emb, axis=1) / aspect_len[:, None]              # (B, E)

    def pad2(a, r, c):
        return jnp.zeros((r, c), a.dtype).at[:a.shape[0], :a.shape[1]].set(a)

    memory_p = jnp.zeros((B_pad, Lm, E_pad), memory.dtype).at[:B, :Lt, :E].set(memory)
    x0_p = jnp.zeros((B_pad, E_pad), x0.dtype).at[:B, :E].set(x0)

    wk, bk = pad2(params["w_k"], E_pad, H_pad), pad2(params["b_k"], 1, H_pad)
    wq, bq = pad2(params["w_q"], E_pad, H_pad), pad2(params["b_q"], 1, H_pad)
    attw = pad2(params["att_w"], 2, H_pad)
    wp, bp = pad2(params["w_proj"], H_pad, E_pad), pad2(params["b_proj"], 1, E_pad)
    wx, bx = pad2(params["w_x"], E_pad, E_pad), pad2(params["b_x"], 1, E_pad)
    wd, bd = pad2(params["w_dense"], E_pad, P_pad), pad2(params["b_dense"], 1, P_pad)

    kernel = functools.partial(_memnet_kernel, hops=hops)

    def full_spec(a):
        return pl.BlockSpec(a.shape, lambda i, ml: (0,) * a.ndim)

    in_arrays = (memory_p, x0_p, wk, bk, wq, bq, attw, wp, bp, wx, bx, wd, bd)
    in_specs = [
        pl.BlockSpec((TB, Lm, E_pad), lambda i, ml: (i, 0, 0)),   # memory tile
        pl.BlockSpec((TB, E_pad), lambda i, ml: (i, 0)),          # aspect mean tile
        full_spec(wk), full_spec(bk), full_spec(wq), full_spec(bq), full_spec(attw),
        full_spec(wp), full_spec(bp), full_spec(wx), full_spec(bx),
        full_spec(wd), full_spec(bd),
    ]

    flops = B_pad * (2 * Lm * E_pad * H_pad
                     + hops * (2 * E_pad * E_pad + 2 * E_pad * H_pad
                               + 4 * Lm * H_pad + 2 * H_pad * E_pad)
                     + 2 * E_pad * P_pad)
    bytes_accessed = (sum(int(a.size) * a.dtype.itemsize for a in in_arrays)
                      + B_pad * P_pad * 4)
    cost = pl.CostEstimate(flops=int(flops),
                           transcendentals=int(B_pad * hops * 2 * Lm),
                           bytes_accessed=int(bytes_accessed))

    out = pl.pallas_call(
        kernel,
        out_shape=jax.ShapeDtypeStruct((B_pad, P_pad), jnp.float32),
        grid_spec=pltpu.PrefetchScalarGridSpec(
            num_scalar_prefetch=1,
            grid=(B_pad // TB,),
            in_specs=in_specs,
            out_specs=pl.BlockSpec((TB, P_pad), lambda i, ml: (i, 0)),
        ),
        compiler_params=pltpu.CompilerParams(
            dimension_semantics=("parallel",),
            vmem_limit_bytes=48 * 1024 * 1024),
        cost_estimate=cost,
    )(max_len, *in_arrays)

    return out[:B, :P]                               # (B, P)


def _reference_forward(text_indices, aspect_indices, params, hops):
    """Pure-JAX mirror of the PyTorch MemNet.forward (for validation)."""
    emb = params["embedding"]
    memory_len = jnp.sum(text_indices != 0, axis=-1)
    aspect_len = jnp.sum(aspect_indices != 0, axis=-1).astype(jnp.float32)
    memory = emb[text_indices]
    max_len = int(jnp.max(memory_len))
    memory = memory[:, :max_len, :]
    mask = (jnp.arange(max_len)[None, :] < memory_len[:, None]).astype(memory.dtype)
    memory = memory * mask[:, :, None]
    aspect = jnp.sum(emb[aspect_indices], axis=1) / aspect_len[:, None]

    kx = jnp.einsum("ble,eh->blh", memory, params["w_k"]) + params["b_k"][0]
    att_k, att_q = params["att_w"][0], params["att_w"][1]
    sk = jnp.einsum("blh,h->bl", kx, att_k)
    x = aspect
    for _ in range(hops):
        x = x @ params["w_x"] + params["b_x"][0]
        qx = x @ params["w_q"] + params["b_q"][0]
        sq = qx @ att_q
        s = jnp.tanh(sk + sq[:, None])
        attn = jax.nn.softmax(s, axis=-1)
        out = jnp.einsum("bl,blh->bh", attn, kx)
        out = out @ params["w_proj"] + params["b_proj"][0]
        x = out + x
    return x @ params["w_dense"] + params["b_dense"][0]


if __name__ == "__main__":
    key = jax.random.PRNGKey(0)
    ks = jax.random.split(key, 10)

    V, E, P = 50, 32, 3        # vocab, embed_dim, polarities_dim
    B, Lt, La = 2, 20, 8       # batch, text len, aspect len
    hops = 3
    H = E                      # n_head=1 -> hidden_dim == embed_dim

    # token indices (0 == padding); rows padded at the tail like ABSA data.
    # Both rows end before Lt so the in-kernel max_len masking path is exercised.
    text = jax.random.randint(ks[0], (B, Lt), 1, V, dtype=jnp.int32)
    text = text.at[0, 14:].set(0)
    text = text.at[1, 10:].set(0)
    aspect = jax.random.randint(ks[1], (B, La), 1, V, dtype=jnp.int32)
    aspect = aspect.at[0, 5:].set(0)
    aspect = aspect.at[1, 3:].set(0)

    emb = jax.random.normal(ks[2], (V, E), dtype=jnp.float32) * 0.5
    emb = emb.at[0].set(0.0)   # conventional zero row for the padding index

    def lin(k, fan_in, shape):
        bound = 1.0 / math.sqrt(fan_in)
        return jax.random.uniform(k, shape, jnp.float32, -bound, bound)

    params = dict(
        embedding=emb,
        w_k=lin(ks[3], E, (E, H)), b_k=lin(ks[3], E, (1, H)),
        w_q=lin(ks[4], E, (E, H)), b_q=lin(ks[4], E, (1, H)),
        att_w=lin(ks[5], H, (2, H)),            # MLP score weight (k-half / q-half)
        w_proj=lin(ks[6], H, (H, E)), b_proj=lin(ks[6], H, (1, E)),
        w_x=lin(ks[7], E, (E, E)), b_x=lin(ks[7], E, (1, E)),
        w_dense=lin(ks[8], E, (E, P)), b_dense=lin(ks[8], E, (1, P)),
    )

    fwd = jax.jit(memnet_forward, static_argnums=(3,))
    out = jax.block_until_ready(fwd(text, aspect, params, hops))

    ref = _reference_forward(text, aspect, params, hops)
    assert out.shape == (B, P)
    assert bool(jnp.all(jnp.isfinite(out)))
    assert jnp.allclose(out, ref, atol=2e-2, rtol=2e-2), (out, ref)
    print("KERNEL_OK")
</pallas_src>

<mosaic_0001>
module attributes {stable_mosaic.version = 11 : i64} {
  func.func @_memnet_kernel(%arg0: i32, %arg1: memref<1xi32, #tpu.memory_space<smem>>, %arg2: memref<8x24x128xf32, #tpu.memory_space<vmem>>, %arg3: memref<8x128xf32, #tpu.memory_space<vmem>>, %arg4: memref<128x128xf32, #tpu.memory_space<vmem>>, %arg5: memref<1x128xf32, #tpu.memory_space<vmem>>, %arg6: memref<128x128xf32, #tpu.memory_space<vmem>>, %arg7: memref<1x128xf32, #tpu.memory_space<vmem>>, %arg8: memref<2x128xf32, #tpu.memory_space<vmem>>, %arg9: memref<128x128xf32, #tpu.memory_space<vmem>>, %arg10: memref<1x128xf32, #tpu.memory_space<vmem>>, %arg11: memref<128x128xf32, #tpu.memory_space<vmem>>, %arg12: memref<1x128xf32, #tpu.memory_space<vmem>>, %arg13: memref<128x128xf32, #tpu.memory_space<vmem>>, %arg14: memref<1x128xf32, #tpu.memory_space<vmem>>, %arg15: memref<8x128xf32, #tpu.memory_space<vmem>>) attributes {dimension_semantics = [#tpu.dimension_semantics<parallel>], iteration_bounds = array<i64: 1>, scalar_prefetch = 1 : i64, scratch_operands = 0 : i64, tpu.core_type = #tpu.core_type<tc>, window_params = [{transform_indices = @transform_0, window_bounds = array<i64: 8, 24, 128>}, {transform_indices = @transform_1, window_bounds = array<i64: 8, 128>}, {pipeline_mode = #tpu.pipeline_mode<synchronous>, transform_indices = @transform_2, window_bounds = array<i64: 128, 128>}, {pipeline_mode = #tpu.pipeline_mode<synchronous>, transform_indices = @transform_3, window_bounds = array<i64: 1, 128>}, {pipeline_mode = #tpu.pipeline_mode<synchronous>, transform_indices = @transform_4, window_bounds = array<i64: 128, 128>}, {pipeline_mode = #tpu.pipeline_mode<synchronous>, transform_indices = @transform_5, window_bounds = array<i64: 1, 128>}, {pipeline_mode = #tpu.pipeline_mode<synchronous>, transform_indices = @transform_6, window_bounds = array<i64: 2, 128>}, {pipeline_mode = #tpu.pipeline_mode<synchronous>, transform_indices = @transform_7, window_bounds = array<i64: 128, 128>}, {pipeline_mode = #tpu.pipeline_mode<synchronous>, transform_indices = @transform_8, window_bounds = array<i64: 1, 128>}, {pipeline_mode = #tpu.pipeline_mode<synchronous>, transform_indices = @transform_9, window_bounds = array<i64: 128, 128>}, {pipeline_mode = #tpu.pipeline_mode<synchronous>, transform_indices = @transform_10, window_bounds = array<i64: 1, 128>}, {pipeline_mode = #tpu.pipeline_mode<synchronous>, transform_indices = @transform_11, window_bounds = array<i64: 128, 128>}, {pipeline_mode = #tpu.pipeline_mode<synchronous>, transform_indices = @transform_12, window_bounds = array<i64: 1, 128>}, {transform_indices = @transform_13, window_bounds = array<i64: 8, 128>}]} {
    %c0 = arith.constant 0 : index
    %c0_0 = arith.constant 0 : index
    %c0_1 = arith.constant 0 : index
    %0 = vector.load %arg2[%c0, %c0_0, %c0_1] : memref<8x24x128xf32, #tpu.memory_space<vmem>>, vector<8x24x128xf32>
    %c0_2 = arith.constant 0 : index
    %c0_3 = arith.constant 0 : index
    %1 = vector.load %arg4[%c0_2, %c0_3] : memref<128x128xf32, #tpu.memory_space<vmem>>, vector<128x128xf32>
    %c0_4 = arith.constant 0 : index
    %c0_5 = arith.constant 0 : index
    %2 = vector.load %arg5[%c0_4, %c0_5] : memref<1x128xf32, #tpu.memory_space<vmem>>, vector<1x128xf32>
    %c0_6 = arith.constant 0 : index
    %c0_7 = arith.constant 0 : index
    %3 = vector.load %arg6[%c0_6, %c0_7] : memref<128x128xf32, #tpu.memory_space<vmem>>, vector<128x128xf32>
    %c0_8 = arith.constant 0 : index
    %c0_9 = arith.constant 0 : index
    %4 = vector.load %arg7[%c0_8, %c0_9] : memref<1x128xf32, #tpu.memory_space<vmem>>, vector<1x128xf32>
    %c0_10 = arith.constant 0 : index
    %c0_11 = arith.constant 0 : index
    %5 = vector.load %arg8[%c0_10, %c0_11] : memref<2x128xf32, #tpu.memory_space<vmem>>, vector<2x128xf32>
    %c0_12 = arith.constant 0 : index
    %c0_13 = arith.constant 0 : index
    %6 = vector.load %arg9[%c0_12, %c0_13] : memref<128x128xf32, #tpu.memory_space<vmem>>, vector<128x128xf32>
    %c0_14 = arith.constant 0 : index
    %c0_15 = arith.constant 0 : index
    %7 = vector.load %arg10[%c0_14, %c0_15] : memref<1x128xf32, #tpu.memory_space<vmem>>, vector<1x128xf32>
    %c0_16 = arith.constant 0 : index
    %c0_17 = arith.constant 0 : index
    %8 = vector.load %arg11[%c0_16, %c0_17] : memref<128x128xf32, #tpu.memory_space<vmem>>, vector<128x128xf32>
    %c0_18 = arith.constant 0 : index
    %c0_19 = arith.constant 0 : index
    %9 = vector.load %arg12[%c0_18, %c0_19] : memref<1x128xf32, #tpu.memory_space<vmem>>, vector<1x128xf32>
    %c0_20 = arith.constant 0 : index
    %c0_21 = arith.constant 0 : index
    %10 = vector.load %arg13[%c0_20, %c0_21] : memref<128x128xf32, #tpu.memory_space<vmem>>, vector<128x128xf32>
    %c0_22 = arith.constant 0 : index
    %c0_23 = arith.constant 0 : index
    %11 = vector.load %arg14[%c0_22, %c0_23] : memref<1x128xf32, #tpu.memory_space<vmem>>, vector<1x128xf32>
    %12 = vector.shape_cast %0 : vector<8x24x128xf32> to vector<192x128xf32>
    %cst = arith.constant dense<0.000000e+00> : vector<192x128xf32>
    %13 = tpu.matmul %12, %1, %cst {dimension_numbers = #tpu.dot_dimension_numbers<[1], [0], [0], [1], [0, 0, 1, 1], [], []>} : vector<192x128xf32>, vector<128x128xf32>, vector<192x128xf32> -> vector<192x128xf32>
    %14 = vector.broadcast %2 : vector<1x128xf32> to vector<192x128xf32>
    %15 = arith.addf %13, %14 : vector<192x128xf32>
    %16 = vector.shape_cast %15 : vector<192x128xf32> to vector<8x24x128xf32>
    %17 = vector.extract_strided_slice %5 {offsets = [0, 0], sizes = [1, 128], strides = [1, 1]} : vector<2x128xf32> to vector<1x128xf32>
    %18 = vector.extract_strided_slice %5 {offsets = [1, 0], sizes = [1, 128], strides = [1, 1]} : vector<2x128xf32> to vector<1x128xf32>
    %19 = vector.shape_cast %17 : vector<1x128xf32> to vector<1x1x128xf32>
    %20 = vector.broadcast %19 : vector<1x1x128xf32> to vector<8x24x128xf32>
    %21 = arith.mulf %16, %20 : vector<8x24x128xf32>
    %cst_24 = arith.constant dense<0.000000e+00> : vector<8x24xf32>
    %22 = vector.multi_reduction <add>, %21, %cst_24 [2] : vector<8x24x128xf32> to vector<8x24xf32>
    %23 = tpu.iota {dimensions = array<i32: 1>} : vector<8x24xi32>
    %c0_25 = arith.constant 0 : index
    %24 = memref.load %arg1[%c0_25] : memref<1xi32, #tpu.memory_space<smem>>
    %25 = vector.broadcast %24 : i32 to vector<8x24xi32>
    %26 = arith.cmpi slt, %23, %25 : vector<8x24xi32>
    %c0_26 = arith.constant 0 : index
    %c0_27 = arith.constant 0 : index
    %27 = vector.load %arg3[%c0_26, %c0_27] : memref<8x128xf32, #tpu.memory_space<vmem>>, vector<8x128xf32>
    %cst_28 = arith.constant dense<0.000000e+00> : vector<8x128xf32>
    %28 = tpu.matmul %27, %8, %cst_28 {dimension_numbers = #tpu.dot_dimension_numbers<[1], [0], [0], [1], [0, 0, 1, 1], [], []>} : vector<8x128xf32>, vector<128x128xf32>, vector<8x128xf32> -> vector<8x128xf32>
    %29 = vector.broadcast %9 : vector<1x128xf32> to vector<8x128xf32>
    %30 = arith.addf %28, %29 : vector<8x128xf32>
    %cst_29 = arith.constant dense<0.000000e+00> : vector<8x128xf32>
    %31 = tpu.matmul %30, %3, %cst_29 {dimension_numbers = #tpu.dot_dimension_numbers<[1], [0], [0], [1], [0, 0, 1, 1], [], []>} : vector<8x128xf32>, vector<128x128xf32>, vector<8x128xf32> -> vector<8x128xf32>
    %32 = vector.broadcast %4 : vector<1x128xf32> to vector<8x128xf32>
    %33 = arith.addf %31, %32 : vector<8x128xf32>
    %34 = vector.broadcast %18 : vector<1x128xf32> to vector<8x128xf32>
    %35 = arith.mulf %33, %34 : vector<8x128xf32>
    %cst_30 = arith.constant dense<0.000000e+00> : vector<8xf32>
    %36 = vector.multi_reduction <add>, %35, %cst_30 [1] : vector<8x128xf32> to vector<8xf32>
    %37 = vector.shape_cast %36 : vector<8xf32> to vector<8x1xf32>
    %38 = vector.broadcast %37 : vector<8x1xf32> to vector<8x24xf32>
    %39 = arith.addf %22, %38 : vector<8x24xf32>
    %40 = math.tanh %39 : vector<8x24xf32>
    %cst_31 = arith.constant -1.000000e+30 : f32
    %41 = vector.broadcast %cst_31 : f32 to vector<8x24xf32>
    %42 = arith.select %26, %40, %41 : vector<8x24xi1>, vector<8x24xf32>
    %cst_32 = arith.constant dense<0xFF800000> : vector<8xf32>
    %43 = vector.multi_reduction <maximumf>, %42, %cst_32 [1] : vector<8x24xf32> to vector<8xf32>
    %44 = vector.shape_cast %43 : vector<8xf32> to vector<8x1xf32>
    %45 = vector.broadcast %44 : vector<8x1xf32> to vector<8x24xf32>
    %46 = arith.subf %42, %45 : vector<8x24xf32>
    %47 = math.exp %46 : vector<8x24xf32>
    %cst_33 = arith.constant 0.000000e+00 : f32
    %48 = vector.broadcast %cst_33 : f32 to vector<8x24xf32>
    %49 = arith.select %26, %47, %48 : vector<8x24xi1>, vector<8x24xf32>
    %cst_34 = arith.constant dense<0.000000e+00> : vector<8xf32>
    %50 = vector.multi_reduction <add>, %49, %cst_34 [1] : vector<8x24xf32> to vector<8xf32>
    %51 = vector.shape_cast %50 : vector<8xf32> to vector<8x1xf32>
    %52 = tpu.reciprocal %51 {approx = true} : vector<8x1xf32> -> vector<8x1xf32>
    %53 = vector.broadcast %52 : vector<8x1xf32> to vector<8x24xf32>
    %54 = arith.mulf %49, %53 : vector<8x24xf32>
    %55 = vector.shape_cast %54 : vector<8x24xf32> to vector<8x1x24xf32>
    "tpu.trace_start"() <{level = 10 : i32, message = "bql,blh->bqh"}> : () -> ()
    %cst_35 = arith.constant dense<0.000000e+00> : vector<8x1x128xf32>
    %56 = tpu.matmul %55, %16, %cst_35 {dimension_numbers = #tpu.dot_dimension_numbers<[2], [1], [1], [2], [0, 0, 0, 1, 1, 2], [0], [0]>} : vector<8x1x24xf32>, vector<8x24x128xf32>, vector<8x1x128xf32> -> vector<8x1x128xf32>
    "tpu.trace_stop"() : () -> ()
    %57 = vector.shape_cast %56 : vector<8x1x128xf32> to vector<8x128xf32>
    %cst_36 = arith.constant dense<0.000000e+00> : vector<8x128xf32>
    %58 = tpu.matmul %57, %6, %cst_36 {dimension_numbers = #tpu.dot_dimension_numbers<[1], [0], [0], [1], [0, 0, 1, 1], [], []>} : vector<8x128xf32>, vector<128x128xf32>, vector<8x128xf32> -> vector<8x128xf32>
    %59 = vector.broadcast %7 : vector<1x128xf32> to vector<8x128xf32>
    %60 = arith.addf %58, %59 : vector<8x128xf32>
    %61 = arith.addf %60, %30 : vector<8x128xf32>
    %cst_37 = arith.constant dense<0.000000e+00> : vector<8x128xf32>
    %62 = tpu.matmul %61, %8, %cst_37 {dimension_numbers = #tpu.dot_dimension_numbers<[1], [0], [0], [1], [0, 0, 1, 1], [], []>} : vector<8x128xf32>, vector<128x128xf32>, vector<8x128xf32> -> vector<8x128xf32>
    %63 = vector.broadcast %9 : vector<1x128xf32> to vector<8x128xf32>
    %64 = arith.addf %62, %63 : vector<8x128xf32>
    %cst_38 = arith.constant dense<0.000000e+00> : vector<8x128xf32>
    %65 = tpu.matmul %64, %3, %cst_38 {dimension_numbers = #tpu.dot_dimension_numbers<[1], [0], [0], [1], [0, 0, 1, 1], [], []>} : vector<8x128xf32>, vector<128x128xf32>, vector<8x128xf32> -> vector<8x128xf32>
    %66 = vector.broadcast %4 : vector<1x128xf32> to vector<8x128xf32>
    %67 = arith.addf %65, %66 : vector<8x128xf32>
    %68 = vector.broadcast %18 : vector<1x128xf32> to vector<8x128xf32>
    %69 = arith.mulf %67, %68 : vector<8x128xf32>
    %cst_39 = arith.constant dense<0.000000e+00> : vector<8xf32>
    %70 = vector.multi_reduction <add>, %69, %cst_39 [1] : vector<8x128xf32> to vector<8xf32>
    %71 = vector.shape_cast %70 : vector<8xf32> to vector<8x1xf32>
    %72 = vector.broadcast %71 : vector<8x1xf32> to vector<8x24xf32>
    %73 = arith.addf %22, %72 : vector<8x24xf32>
    %74 = math.tanh %73 : vector<8x24xf32>
    %cst_40 = arith.constant -1.000000e+30 : f32
    %75 = vector.broadcast %cst_40 : f32 to vector<8x24xf32>
    %76 = arith.select %26, %74, %75 : vector<8x24xi1>, vector<8x24xf32>
    %cst_41 = arith.constant dense<0xFF800000> : vector<8xf32>
    %77 = vector.multi_reduction <maximumf>, %76, %cst_41 [1] : vector<8x24xf32> to vector<8xf32>
    %78 = vector.shape_cast %77 : vector<8xf32> to vector<8x1xf32>
    %79 = vector.broadcast %78 : vector<8x1xf32> to vector<8x24xf32>
    %80 = arith.subf %76, %79 : vector<8x24xf32>
    %81 = math.exp %80 : vector<8x24xf32>
    %cst_42 = arith.constant 0.000000e+00 : f32
    %82 = vector.broadcast %cst_42 : f32 to vector<8x24xf32>
    %83 = arith.select %26, %81, %82 : vector<8x24xi1>, vector<8x24xf32>
    %cst_43 = arith.constant dense<0.000000e+00> : vector<8xf32>
    %84 = vector.multi_reduction <add>, %83, %cst_43 [1] : vector<8x24xf32> to vector<8xf32>
    %85 = vector.shape_cast %84 : vector<8xf32> to vector<8x1xf32>
    %86 = tpu.reciprocal %85 {approx = true} : vector<8x1xf32> -> vector<8x1xf32>
    %87 = vector.broadcast %86 : vector<8x1xf32> to vector<8x24xf32>
    %88 = arith.mulf %83, %87 : vector<8x24xf32>
    %89 = vector.shape_cast %88 : vector<8x24xf32> to vector<8x1x24xf32>
    "tpu.trace_start"() <{level = 10 : i32, message = "bql,blh->bqh"}> : () -> ()
    %cst_44 = arith.constant dense<0.000000e+00> : vector<8x1x128xf32>
    %90 = tpu.matmul %89, %16, %cst_44 {dimension_numbers = #tpu.dot_dimension_numbers<[2], [1], [1], [2], [0, 0, 0, 1, 1, 2], [0], [0]>} : vector<8x1x24xf32>, vector<8x24x128xf32>, vector<8x1x128xf32> -> vector<8x1x128xf32>
    "tpu.trace_stop"() : () -> ()
    %91 = vector.shape_cast %90 : vector<8x1x128xf32> to vector<8x128xf32>
    %cst_45 = arith.constant dense<0.000000e+00> : vector<8x128xf32>
    %92 = tpu.matmul %91, %6, %cst_45 {dimension_numbers = #tpu.dot_dimension_numbers<[1], [0], [0], [1], [0, 0, 1, 1], [], []>} : vector<8x128xf32>, vector<128x128xf32>, vector<8x128xf32> -> vector<8x128xf32>
    %93 = vector.broadcast %7 : vector<1x128xf32> to vector<8x128xf32>
    %94 = arith.addf %92, %93 : vector<8x128xf32>
    %95 = arith.addf %94, %64 : vector<8x128xf32>
    %cst_46 = arith.constant dense<0.000000e+00> : vector<8x128xf32>
    %96 = tpu.matmul %95, %8, %cst_46 {dimension_numbers = #tpu.dot_dimension_numbers<[1], [0], [0], [1], [0, 0, 1, 1], [], []>} : vector<8x128xf32>, vector<128x128xf32>, vector<8x128xf32> -> vector<8x128xf32>
    %97 = vector.broadcast %9 : vector<1x128xf32> to vector<8x128xf32>
    %98 = arith.addf %96, %97 : vector<8x128xf32>
    %cst_47 = arith.constant dense<0.000000e+00> : vector<8x128xf32>
    %99 = tpu.matmul %98, %3, %cst_47 {dimension_numbers = #tpu.dot_dimension_numbers<[1], [0], [0], [1], [0, 0, 1, 1], [], []>} : vector<8x128xf32>, vector<128x128xf32>, vector<8x128xf32> -> vector<8x128xf32>
    %100 = vector.broadcast %4 : vector<1x128xf32> to vector<8x128xf32>
    %101 = arith.addf %99, %100 : vector<8x128xf32>
    %102 = vector.broadcast %18 : vector<1x128xf32> to vector<8x128xf32>
    %103 = arith.mulf %101, %102 : vector<8x128xf32>
    %cst_48 = arith.constant dense<0.000000e+00> : vector<8xf32>
    %104 = vector.multi_reduction <add>, %103, %cst_48 [1] : vector<8x128xf32> to vector<8xf32>
    %105 = vector.shape_cast %104 : vector<8xf32> to vector<8x1xf32>
    %106 = vector.broadcast %105 : vector<8x1xf32> to vector<8x24xf32>
    %107 = arith.addf %22, %106 : vector<8x24xf32>
    %108 = math.tanh %107 : vector<8x24xf32>
    %cst_49 = arith.constant -1.000000e+30 : f32
    %109 = vector.broadcast %cst_49 : f32 to vector<8x24xf32>
    %110 = arith.select %26, %108, %109 : vector<8x24xi1>, vector<8x24xf32>
    %cst_50 = arith.constant dense<0xFF800000> : vector<8xf32>
    %111 = vector.multi_reduction <maximumf>, %110, %cst_50 [1] : vector<8x24xf32> to vector<8xf32>
    %112 = vector.shape_cast %111 : vector<8xf32> to vector<8x1xf32>
    %113 = vector.broadcast %112 : vector<8x1xf32> to vector<8x24xf32>
    %114 = arith.subf %110, %113 : vector<8x24xf32>
    %115 = math.exp %114 : vector<8x24xf32>
    %cst_51 = arith.constant 0.000000e+00 : f32
    %116 = vector.broadcast %cst_51 : f32 to vector<8x24xf32>
    %117 = arith.select %26, %115, %116 : vector<8x24xi1>, vector<8x24xf32>
    %cst_52 = arith.constant dense<0.000000e+00> : vector<8xf32>
    %118 = vector.multi_reduction <add>, %117, %cst_52 [1] : vector<8x24xf32> to vector<8xf32>
    %119 = vector.shape_cast %118 : vector<8xf32> to vector<8x1xf32>
    %120 = tpu.reciprocal %119 {approx = true} : vector<8x1xf32> -> vector<8x1xf32>
    %121 = vector.broadcast %120 : vector<8x1xf32> to vector<8x24xf32>
    %122 = arith.mulf %117, %121 : vector<8x24xf32>
    %123 = vector.shape_cast %122 : vector<8x24xf32> to vector<8x1x24xf32>
    "tpu.trace_start"() <{level = 10 : i32, message = "bql,blh->bqh"}> : () -> ()
    %cst_53 = arith.constant dense<0.000000e+00> : vector<8x1x128xf32>
    %124 = tpu.matmul %123, %16, %cst_53 {dimension_numbers = #tpu.dot_dimension_numbers<[2], [1], [1], [2], [0, 0, 0, 1, 1, 2], [0], [0]>} : vector<8x1x24xf32>, vector<8x24x128xf32>, vector<8x1x128xf32> -> vector<8x1x128xf32>
    "tpu.trace_stop"() : () -> ()
    %125 = vector.shape_cast %124 : vector<8x1x128xf32> to vector<8x128xf32>
    %cst_54 = arith.constant dense<0.000000e+00> : vector<8x128xf32>
    %126 = tpu.matmul %125, %6, %cst_54 {dimension_numbers = #tpu.dot_dimension_numbers<[1], [0], [0], [1], [0, 0, 1, 1], [], []>} : vector<8x128xf32>, vector<128x128xf32>, vector<8x128xf32> -> vector<8x128xf32>
    %127 = vector.broadcast %7 : vector<1x128xf32> to vector<8x128xf32>
    %128 = arith.addf %126, %127 : vector<8x128xf32>
    %129 = arith.addf %128, %98 : vector<8x128xf32>
    %cst_55 = arith.constant dense<0.000000e+00> : vector<8x128xf32>
    %130 = tpu.matmul %129, %10, %cst_55 {dimension_numbers = #tpu.dot_dimension_numbers<[1], [0], [0], [1], [0, 0, 1, 1], [], []>} : vector<8x128xf32>, vector<128x128xf32>, vector<8x128xf32> -> vector<8x128xf32>
    %131 = vector.broadcast %11 : vector<1x128xf32> to vector<8x128xf32>
    %132 = arith.addf %130, %131 : vector<8x128xf32>
    %c0_56 = arith.constant 0 : index
    %c0_57 = arith.constant 0 : index
    %133 = vector.load %arg15[%c0_56, %c0_57] : memref<8x128xf32, #tpu.memory_space<vmem>>, vector<8x128xf32>
    tpu.vector_store %arg15[%c0_56, %c0_57], %132 {strides = array<i32>} : memref<8x128xf32, #tpu.memory_space<vmem>>, vector<8x128xf32>,
    return
  }
  func.func @transform_0(%arg0: i32, %arg1: memref<1xi32, #tpu.memory_space<smem>>) -> (i32, i32, i32) {
    %c0_i32 = arith.constant 0 : i32
    %c0_i32_0 = arith.constant 0 : i32
    %c0_i32_1 = arith.constant 0 : i32
    return %arg0, %c0_i32, %c0_i32_0 : i32, i32, i32
  }
  func.func @transform_1(%arg0: i32, %arg1: memref<1xi32, #tpu.memory_space<smem>>) -> (i32, i32) {
    %c0_i32 = arith.constant 0 : i32
    %c0_i32_0 = arith.constant 0 : i32
    return %arg0, %c0_i32 : i32, i32
  }
  func.func @transform_2(%arg0: i32, %arg1: memref<1xi32, #tpu.memory_space<smem>>) -> (i32, i32) {
    %c0_i32 = arith.constant 0 : i32
    %c0_i32_0 = arith.constant 0 : i32
    %c0_i32_1 = arith.constant 0 : i32
    return %c0_i32, %c0_i32_0 : i32, i32
  }
  func.func @transform_3(%arg0: i32, %arg1: memref<1xi32, #tpu.memory_space<smem>>) -> (i32, i32) {
    %c0_i32 = arith.constant 0 : i32
    %c0_i32_0 = arith.constant 0 : i32
    %c0_i32_1 = arith.constant 0 : i32
    return %c0_i32, %c0_i32_0 : i32, i32
  }
  func.func @transform_4(%arg0: i32, %arg1: memref<1xi32, #tpu.memory_space<smem>>) -> (i32, i32) {
    %c0_i32 = arith.constant 0 : i32
    %c0_i32_0 = arith.constant 0 : i32
    %c0_i32_1 = arith.constant 0 : i32
    return %c0_i32, %c0_i32_0 : i32, i32
  }
  func.func @transform_5(%arg0: i32, %arg1: memref<1xi32, #tpu.memory_space<smem>>) -> (i32, i32) {
    %c0_i32 = arith.constant 0 : i32
    %c0_i32_0 = arith.constant 0 : i32
    %c0_i32_1 = arith.constant 0 : i32
    return %c0_i32, %c0_i32_0 : i32, i32
  }
  func.func @transform_6(%arg0: i32, %arg1: memref<1xi32, #tpu.memory_space<smem>>) -> (i32, i32) {
    %c0_i32 = arith.constant 0 : i32
    %c0_i32_0 = arith.constant 0 : i32
    %c0_i32_1 = arith.constant 0 : i32
    return %c0_i32, %c0_i32_0 : i32, i32
  }
  func.func @transform_7(%arg0: i32, %arg1: memref<1xi32, #tpu.memory_space<smem>>) -> (i32, i32) {
    %c0_i32 = arith.constant 0 : i32
    %c0_i32_0 = arith.constant 0 : i32
    %c0_i32_1 = arith.constant 0 : i32
    return %c0_i32, %c0_i32_0 : i32, i32
  }
  func.func @transform_8(%arg0: i32, %arg1: memref<1xi32, #tpu.memory_space<smem>>) -> (i32, i32) {
    %c0_i32 = arith.constant 0 : i32
    %c0_i32_0 = arith.constant 0 : i32
    %c0_i32_1 = arith.constant 0 : i32
    return %c0_i32, %c0_i32_0 : i32, i32
  }
  func.func @transform_9(%arg0: i32, %arg1: memref<1xi32, #tpu.memory_space<smem>>) -> (i32, i32) {
    %c0_i32 = arith.constant 0 : i32
    %c0_i32_0 = arith.constant 0 : i32
    %c0_i32_1 = arith.constant 0 : i32
    return %c0_i32, %c0_i32_0 : i32, i32
  }
  func.func @transform_10(%arg0: i32, %arg1: memref<1xi32, #tpu.memory_space<smem>>) -> (i32, i32) {
    %c0_i32 = arith.constant 0 : i32
    %c0_i32_0 = arith.constant 0 : i32
    %c0_i32_1 = arith.constant 0 : i32
    return %c0_i32, %c0_i32_0 : i32, i32
  }
  func.func @transform_11(%arg0: i32, %arg1: memref<1xi32, #tpu.memory_space<smem>>) -> (i32, i32) {
    %c0_i32 = arith.constant 0 : i32
    %c0_i32_0 = arith.constant 0 : i32
    %c0_i32_1 = arith.constant 0 : i32
    return %c0_i32, %c0_i32_0 : i32, i32
  }
  func.func @transform_12(%arg0: i32, %arg1: memref<1xi32, #tpu.memory_space<smem>>) -> (i32, i32) {
    %c0_i32 = arith.constant 0 : i32
    %c0_i32_0 = arith.constant 0 : i32
    %c0_i32_1 = arith.constant 0 : i32
    return %c0_i32, %c0_i32_0 : i32, i32
  }
  func.func @transform_13(%arg0: i32, %arg1: memref<1xi32, #tpu.memory_space<smem>>) -> (i32, i32) {
    %c0_i32 = arith.constant 0 : i32
    %c0_i32_0 = arith.constant 0 : i32
    return %arg0, %c0_i32 : i32, i32
  }
}

</mosaic_0001>

<bundles_post_ra>
// kernel: memnet_forward.1
= control target key start
LH: loop header
LB: loop body
LE: loop exit
PB: predicated region body
PF: predicated region fallthrough
CT: control target
= control target key end

     0   :  { %vm541_vm0 = vcmask 130112   ;;  %vm545_vm1 = vcmask 195712   ;;  %vm582_vm2 = vcmask 1041409   ;;  %vm584_vm3 = vcmask 1042434   ;;  %s3458_s3 = inlined_call_operand.vmem [shape: f32[128,128], index: 3, kind: input, shape index: {}]   ;;  %s3459_s4 = inlined_call_operand.vmem [shape: f32[1,128], index: 4, kind: input, shape index: {}]   ;;  %s3460_s1 = inlined_call_operand.vmem [shape: f32[8,24,128], index: 1, kind: input, shape index: {}]   ;;  %s3461_s10 = inlined_call_operand.vmem [shape: f32[128,128], index: 10, kind: input, shape index: {}]   ;;  %s3462_s2 = inlined_call_operand.vmem [shape: f32[8,128], index: 2, kind: input, shape index: {}]   ;;  %s3463_s11 = inlined_call_operand.vmem [shape: f32[1,128], index: 11, kind: input, shape index: {}]   ;;  %s3464_s5 = inlined_call_operand.vmem [shape: f32[128,128], index: 5, kind: input, shape index: {}]   ;;  %s3465_s7 = inlined_call_operand.vmem [shape: f32[2,128], index: 7, kind: input, shape index: {}]   ;;  %s3466_s6 = inlined_call_operand.vmem [shape: f32[1,128], index: 6, kind: input, shape index: {}]   ;;  %s3467_s0 = inlined_call_operand.<no memory space> [shape: s32[1], index: 0, kind: input, shape index: {}]   ;;  %s3468_s8 = inlined_call_operand.vmem [shape: f32[128,128], index: 8, kind: input, shape index: {}]   ;;  %s3469_s9 = inlined_call_operand.vmem [shape: f32[1,128], index: 9, kind: input, shape index: {}]   ;;  %s3470_s12 = inlined_call_operand.vmem [shape: f32[128,128], index: 12, kind: input, shape index: {}]   ;;  %s3471_s13 = inlined_call_operand.vmem [shape: f32[1,128], index: 13, kind: input, shape index: {}]   ;;  %s3472_s14 = inlined_call_operand.vmem [shape: f32[8,128], index: 14, kind: output, shape index: {}]  }
   0x1   :  { %v85_v0 = vld [vmem:[%s3458_s3 + $0x78] sm:$0xff]  ;;  %v84_v1 = vld [vmem:[%s3458_s3 + $0x70] sm:$0xff]  ;;  %v83_v2 = vld [vmem:[%s3458_s3 + $0x68] sm:$0xff]  ;;  %vm586_vm4 = vcmask 1043459   ;;  %vm588_vm5 = vcmask 1044484   ;;  %vm590_vm6 = vcmask 1045509  }
   0x2   :  { %159 = vmatpush.msra.mxu0 %v85_v0  ;;  %1880 = vmatpush.msra.mxu1 %v85_v0  ;;  %v82_v3 = vld [vmem:[%s3458_s3 + $0x60] sm:$0xff]  ;;  %v81_v4 = vld [vmem:[%s3458_s3 + $0x58] sm:$0xff]  ;;  %v80_v5 = vld [vmem:[%s3458_s3 + $0x50] sm:$0xff]  ;;  %vm592_vm7 = vcmask 1046534   ;;  %vm594_vm8 = vcmask 1047559   ;;  %vm598_vm10 = vcmask 195584  }
   0x3   :  { %v79_v6 = vld [vmem:[%s3458_s3 + $0x48] sm:$0xff]  ;;  %v78_v7 = vld [vmem:[%s3458_s3 + $0x40] sm:$0xff]  ;;  %v77_v8 = vld [vmem:[%s3458_s3 + $0x38] sm:$0xff] }
   0x4   :  { %160 = vmatpush.msra.mxu0 %v84_v1  ;;  %1881 = vmatpush.msra.mxu1 %v84_v1  ;;  %v76_v9 = vld [vmem:[%s3458_s3 + $0x30] sm:$0xff]  ;;  %v75_v10 = vld [vmem:[%s3458_s3 + $0x28] sm:$0xff]  ;;  %v74_v11 = vld [vmem:[%s3458_s3 + $0x20] sm:$0xff] }
   0x5   :  { %v73_v12 = vld [vmem:[%s3458_s3 + $0x18] sm:$0xff]  ;;  %v72_v13 = vld [vmem:[%s3458_s3 + $0x10] sm:$0xff]  ;;  %v71_v14 = vld [vmem:[%s3458_s3 + $0x8] sm:$0xff] }
   0x6   :  { %161 = vmatpush.msra.mxu0 %v83_v2  ;;  %1882 = vmatpush.msra.mxu1 %v83_v2  ;;  %v70_v15 = vld [vmem:[%s3458_s3] sm:$0xff]  ;;  %v2245_v18 = vld [vmem:[%s3461_s10 + $0x78] sm:$0xff]  ;;  %v2250_v19 = vld [vmem:[%s3461_s10 + $0x70] sm:$0xff] }
   0x7   :  { %v46_v16 = vld [vmem:[%s3460_s1] sm:$0xff]  ;;  %v2256_v20 = vld [vmem:[%s3461_s10 + $0x68] sm:$0xff]  ;;  %v2274_v24 = vld [vmem:[%s3461_s10 + $0x58] sm:$0xff] }
   0x8   :  { %162 = vmatpush.msra.mxu0 %v82_v3  ;;  %1883 = vmatpush.msra.mxu1 %v82_v3  ;;  %v66_v17 = vld [vmem:[%s3460_s1 + $0xa0] sm:$0xff]  ;;  %v47_v22 = vld [vmem:[%s3460_s1 + $0x8] sm:$0xff]  ;;  %v2280_v25 = vld [vmem:[%s3461_s10 + $0x50] sm:$0xff] }
   0x9   :  { %v2262_v21 = vld [vmem:[%s3461_s10 + $0x60] sm:$0xff]  ;;  %v67_v23 = vld [vmem:[%s3460_s1 + $0xa8] sm:$0xff]  ;;  %v48_v28 = vld [vmem:[%s3460_s1 + $0x10] sm:$0xff] }
   0xa   :  { %163 = vmatpush.msra.mxu0 %v81_v4  ;;  %1884 = vmatpush.msra.mxu1 %v81_v4  ;;  %v2286_v26 = vld [vmem:[%s3461_s10 + $0x48] sm:$0xff]  ;;  %v2292_v27 = vld [vmem:[%s3461_s10 + $0x40] sm:$0xff]  ;;  %v68_v29 = vld [vmem:[%s3460_s1 + $0xb0] sm:$0xff] }
   0xb   :  { %v2304_v30 = vld [vmem:[%s3461_s10 + $0x38] sm:$0xff]  ;;  %v2310_v31 = vld [vmem:[%s3461_s10 + $0x30] sm:$0xff]  ;;  %v2316_v32 = vld [vmem:[%s3461_s10 + $0x28] sm:$0xff] }
   0xc   :  { %164 = vmatpush.msra.mxu0 %v80_v5  ;;  %1885 = vmatpush.msra.mxu1 %v80_v5  ;;  %v2322_v33 = vld [vmem:[%s3461_s10 + $0x20] sm:$0xff]  ;;  %v69_v34 = vld [vmem:[%s3460_s1 + $0xb8] sm:$0xff]  ;;  %v2340_v37 = vld [vmem:[%s3461_s10 + $0x10] sm:$0xff] }
   0xd   :  { %v49_v35 = vld [vmem:[%s3460_s1 + $0x18] sm:$0xff]  ;;  %v2346_v38 = vld [vmem:[%s3461_s10 + $0x8] sm:$0xff]  ;;  %v2352_v39 = vld [vmem:[%s3461_s10] sm:$0xff] }
   0xe   :  { %165 = vmatpush.msra.mxu0 %v79_v6  ;;  %1886 = vmatpush.msra.mxu1 %v79_v6  ;;  %v2334_v36 = vld [vmem:[%s3461_s10 + $0x18] sm:$0xff]  ;;  %v326_v40 = vld [vmem:[%s3462_s2] sm:$0xff]  ;;  %v51_v42 = vld [vmem:[%s3460_s1 + $0x28] sm:$0xff] }
   0xf   :  { %v50_v41 = vld [vmem:[%s3460_s1 + $0x20] sm:$0xff]  ;;  %v52_v43 = vld [vmem:[%s3460_s1 + $0x30] sm:$0xff]  ;;  %v53_v44 = vld [vmem:[%s3460_s1 + $0x38] sm:$0xff] }
  0x10   :  { %166 = vmatpush.msra.mxu0 %v78_v7  ;;  %1887 = vmatpush.msra.mxu1 %v78_v7  ;;  %v2374_v45 = vld [vmem:[%s3464_s5 + $0x78] sm:$0xff]  ;;  %v54_v46 = vld [vmem:[%s3460_s1 + $0x40] sm:$0xff]  ;;  %v2383_v47 = vld [vmem:[%s3464_s5 + $0x70] sm:$0xff] }
  0x11   :  { %353 = vmatpush.msra.mxu2 %v2374_v45  ;;  %v2388_v48 = vld [vmem:[%s3464_s5 + $0x68] sm:$0xff]  ;;  %v2394_v49 = vld [vmem:[%s3464_s5 + $0x60] sm:$0xff]  ;;  %v2400_v50 = vld [vmem:[%s3464_s5 + $0x58] sm:$0xff] }
  0x12   :  { %167 = vmatpush.msra.mxu0 %v77_v8  ;;  %1888 = vmatpush.msra.mxu1 %v77_v8  ;;  %v55_v51 = vld [vmem:[%s3460_s1 + $0x48] sm:$0xff]  ;;  %v2410_v52 = vld [vmem:[%s3464_s5 + $0x50] sm:$0xff]  ;;  %v2421_v54 = vld [vmem:[%s3464_s5 + $0x40] sm:$0xff] }
  0x13   :  { %354 = vmatpush.msra.mxu2 %v2383_v47  ;;  %v2415_v53 = vld [vmem:[%s3464_s5 + $0x48] sm:$0xff]  ;;  %v2427_v55 = vld [vmem:[%s3464_s5 + $0x38] sm:$0xff]  ;;  %v56_v56 = vld [vmem:[%s3460_s1 + $0x50] sm:$0xff] }
  0x14   :  { %168 = vmatpush.msra.mxu0 %v76_v9  ;;  %1889 = vmatpush.msra.mxu1 %v76_v9  ;;  %v2437_v57 = vld [vmem:[%s3464_s5 + $0x30] sm:$0xff]  ;;  %v2442_v58 = vld [vmem:[%s3464_s5 + $0x28] sm:$0xff]  ;;  %v2448_v59 = vld [vmem:[%s3464_s5 + $0x20] sm:$0xff] }
  0x15   :  { %355 = vmatpush.msra.mxu2 %v2388_v48  ;;  %v2454_v60 = vld [vmem:[%s3464_s5 + $0x18] sm:$0xff]  ;;  %v2464_v62 = vld [vmem:[%s3464_s5 + $0x10] sm:$0xff]  ;;  %v2470_v63 = vld [vmem:[%s3464_s5 + $0x8] sm:$0xff] }
  0x16   :  { %169 = vmatpush.msra.mxu0 %v75_v10  ;;  %1890 = vmatpush.msra.mxu1 %v75_v10  ;;  %v57_v61 = vld [vmem:[%s3460_s1 + $0x58] sm:$0xff]  ;;  %3548 = vst [vmem:[#allocation4_spill] sm:$0xff] %v2464_v62  ;;  %v58_v0 = vld [vmem:[%s3460_s1 + $0x60] sm:$0xff]  ;;  %v59_v2 = vld [vmem:[%s3460_s1 + $0x68] sm:$0xff] }
  0x17   :  { %356 = vmatpush.msra.mxu2 %v2394_v49  ;;  %3549 = vst [vmem:[#allocation5_spill] sm:$0xff] %v2470_v63  ;;  %v2479_v1 = vld [vmem:[%s3464_s5] sm:$0xff]  ;;  %v60_v3 = vld [vmem:[%s3460_s1 + $0x70] sm:$0xff]  ;;  %v61_v4 = vld [vmem:[%s3460_s1 + $0x78] sm:$0xff] }
  0x18   :  { %170 = vmatpush.msra.mxu0 %v74_v11  ;;  %1891 = vmatpush.msra.mxu1 %v74_v11  ;;  %3550 = vst [vmem:[#allocation6_spill] sm:$0xff] %v2479_v1  ;;  %v2494_v5 = vld [vmem:[%s3465_s7] sm:$0x3] }
  0x19   :  { %357 = vmatpush.msra.mxu2 %v2400_v50  ;;  %v2499_v6 = vld [vmem:[%s3459_s4] ss:$0 sm:$0xff]  ;;  %v2502_v7 = vperm.slane %v2494_v5, 0 }
  0x1a   :  { %171 = vmatpush.msra.mxu0 %v73_v12  ;;  %1892 = vmatpush.msra.mxu1 %v73_v12  ;;  %v62_v10 = vld [vmem:[%s3460_s1 + $0x80] sm:$0xff] }
  0x1b   :  { %358 = vmatpush.msra.mxu2 %v2410_v52 }
  0x1c   :  { %172 = vmatpush.msra.mxu0 %v72_v13  ;;  %1893 = vmatpush.msra.mxu1 %v72_v13 }
  0x1d   :  { %359 = vmatpush.msra.mxu2 %v2415_v53 }
  0x1e   :  { %173 = vmatpush.msra.mxu0 %v71_v14  ;;  %1894 = vmatpush.msra.mxu1 %v71_v14 }
  0x1f   :  { %360 = vmatpush.msra.mxu2 %v2421_v54 }
  0x20   :  { %174 = vmatpush.msra.mxu0 %v70_v15  ;;  %1895 = vmatpush.msra.mxu1 %v70_v15 }
  0x21   :  { %175 = vmatmul.f32.vlgmr.msra.gmra.mxu0 %v46_v16  ;;  %235 = vmatmul.f32.vlgmr.msra.gmra.mxu1 %v66_v17  ;;  %v63_v16 = vld [vmem:[%s3460_s1 + $0x88] sm:$0xff] }
  0x22   :  { %330 = vmatpush.msrb.mxu1 %v2245_v18  ;;  %361 = vmatpush.msra.mxu2 %v2427_v55 }
  0x24   :  { %331 = vmatpush.msrb.mxu1 %v2250_v19  ;;  %362 = vmatpush.msra.mxu2 %v2437_v57 }
  0x26   :  { %332 = vmatpush.msrb.mxu1 %v2256_v20  ;;  %363 = vmatpush.msra.mxu2 %v2442_v58 }
  0x28   :  { %333 = vmatpush.msrb.mxu1 %v2262_v21  ;;  %364 = vmatpush.msra.mxu2 %v2448_v59 }
  0x29   :  { %178 = vmatmul.f32.gmra.mxu0 %v47_v22  ;;  %238 = vmatmul.f32.gmra.mxu1 %v67_v23 }
  0x2a   :  { %334 = vmatpush.msrb.mxu1 %v2274_v24  ;;  %365 = vmatpush.msra.mxu2 %v2454_v60 }
  0x2c   :  { %335 = vmatpush.msrb.mxu1 %v2280_v25  ;;  %366 = vmatpush.msra.mxu2 %v2464_v62 }
  0x2e   :  { %336 = vmatpush.msrb.mxu1 %v2286_v26  ;;  %367 = vmatpush.msra.mxu2 %v2470_v63 }
  0x30   :  { %337 = vmatpush.msrb.mxu1 %v2292_v27  ;;  %368 = vmatpush.msra.mxu2 %v2479_v1 }
  0x31   :  { %181 = vmatmul.f32.gmra.mxu0 %v48_v28  ;;  %241 = vmatmul.f32.gmra.mxu1 %v68_v29 }
  0x32   :  { %338 = vmatpush.msrb.mxu1 %v2304_v30 }
  0x34   :  { %339 = vmatpush.msrb.mxu1 %v2310_v31 }
  0x36   :  { %340 = vmatpush.msrb.mxu1 %v2316_v32 }
  0x38   :  { %341 = vmatpush.msrb.mxu1 %v2322_v33 }
  0x39   :  { %244 = vmatmul.f32.gmra.mxu1 %v69_v34  ;;  %184 = vmatmul.f32.gmra.mxu0 %v49_v35  ;;  %v64_v35 = vld [vmem:[%s3460_s1 + $0x90] sm:$0xff] }
  0x3a   :  { %342 = vmatpush.msrb.mxu1 %v2334_v36 }
  0x3c   :  { %343 = vmatpush.msrb.mxu1 %v2340_v37 }
  0x3e   :  { %344 = vmatpush.msrb.mxu1 %v2346_v38 }
  0x40   :  { %345 = vmatpush.msrb.mxu1 %v2352_v39 }
  0x41   :  { %346 = vmatmul.f32.vlgmr.msrb.gmra.mxu1 %v326_v40  ;;  %187 = vmatmul.f32.gmra.mxu0 %v50_v41 }
  0x49   :  { %190 = vmatmul.f32.gmra.mxu0 %v51_v42 }
  0x51   :  { %193 = vmatmul.f32.gmra.mxu0 %v52_v43 }
  0x59   :  { %196 = vmatmul.f32.gmra.mxu0 %v53_v44 }
  0x61   :  { %199 = vmatmul.f32.gmra.mxu0 %v54_v46 }
  0x69   :  { %202 = vmatmul.f32.gmra.mxu0 %v55_v51  ;;  %v65_v51 = vld [vmem:[%s3460_s1 + $0x98] sm:$0xff] }
  0x71   :  { %205 = vmatmul.f32.gmra.mxu0 %v56_v56 }
  0x79   :  { %208 = vmatmul.f32.gmra.mxu0 %v57_v61 }
  0x81   :  { %211 = vmatmul.f32.gmra.mxu0 %v58_v0 }
  0x89   :  { %214 = vmatmul.f32.gmra.mxu0 %v59_v2 }
  0x91   :  { %217 = vmatmul.f32.gmra.mxu0 %v60_v3 }
  0x99   :  { %220 = vmatmul.f32.gmra.mxu0 %v61_v4  ;;  %v2563_v4 = vld [vmem:[%s3463_s11] ss:$0 sm:$0xff] }
  0x9a   :  { %3552 = vst [vmem:[#allocation8_spill] sm:$0xff] %v2563_v4 }
  0x9e   :  { %v176_v8 = vpop.f32.mrf.mxu0  ;;  %v236_v9 = vpop.f32.mrf.mxu1 }
  0x9f   :  { %v2508_v11 = vadd.f32 %v2499_v6, %v176_v8  ;;  %v2511_v12 = vadd.f32 %v2499_v6, %v236_v9 }
  0xa1   :  { %3551 = vst [vmem:[#allocation7_spill] sm:$0xff] %v2511_v12  ;;  %766 = vmatpush.msrb.mxu2 %v2511_v12  ;;  %223 = vmatmul.f32.gmra.mxu0 %v62_v10  ;;  %v249_v13 = vmul.f32 %v2502_v7, %v2508_v11  ;;  %v269_v23 = vmul.f32 %v2502_v7, %v2511_v12 }
  0xa3   :  { %273 = vadd.xlane.f32.xlu0 %v249_v13 }
  0xa6   :  { %v179_v14 = vpop.f32.mrf.mxu0  ;;  %v239_v15 = vpop.f32.mrf.mxu1 }
  0xa7   :  { %v2520_v17 = vadd.f32 %v2499_v6, %v179_v14  ;;  %v2527_v28 = vadd.f32 %v2499_v6, %v239_v15 }
  0xa9   :  { %226 = vmatmul.f32.gmra.mxu0 %v63_v16  ;;  %v250_v22 = vmul.f32 %v2502_v7, %v2520_v17  ;;  %v270_v42 = vmul.f32 %v2502_v7, %v2527_v28 }
  0xab   :  { %275 = vadd.xlane.f32.xlu1 %v250_v22  ;;  %313 = vadd.xlane.f32.xlu0 %v269_v23 }
  0xae   :  { %v182_v29 = vpop.f32.mrf.mxu0  ;;  %v242_v34 = vpop.f32.mrf.mxu1 }
  0xaf   :  { %v2533_v40 = vadd.f32 %v2499_v6, %v182_v29  ;;  %v2542_v43 = vadd.f32 %v2499_v6, %v242_v34 }
  0xb1   :  { %634 = vmatpush.msra.mxu3 %v2533_v40  ;;  %v251_v41 = vmul.f32 %v2502_v7, %v2533_v40  ;;  %229 = vmatmul.f32.gmra.mxu0 %v64_v35  ;;  %v271_v0 = vmul.f32 %v2502_v7, %v2542_v43 }
  0xb3   :  { %277 = vadd.xlane.f32.xlu2 %v251_v41  ;;  %315 = vadd.xlane.f32.xlu1 %v270_v42 }
  0xb4   :  { %635 = vmatpush.msra.mxu3 %v2520_v17 }
  0xb6   :  { %v245_v44 = vpop.f32.mrf.mxu1  ;;  %636 = vmatpush.msra.mxu3 %v2508_v11  ;;  %v185_v46 = vpop.f32.mrf.mxu0 }
  0xb7   :  { %v2549_v56 = vadd.f32 %v2499_v6, %v245_v44  ;;  %v2552_v61 = vadd.f32 %v2499_v6, %v185_v46 }
  0xb9   :  { %v272_v2 = vmul.f32 %v2502_v7, %v2549_v56  ;;  %232 = vmatmul.f32.gmra.mxu0 %v65_v51  ;;  %v252_v3 = vmul.f32 %v2502_v7, %v2552_v61 }
  0xbb   :  { %317 = vadd.xlane.f32.xlu2 %v271_v0  ;;  %319 = vadd.xlane.f32.xlu0 %v272_v2 }
  0xbc   :  { %279 = vadd.xlane.f32.xlu1 %v252_v3 }
  0xbe   :  { %v347_v8 = vpop.f32.mrf.mxu1  ;;  %v188_v9 = vpop.f32.mrf.mxu0 }
  0xbf   :  { %v2566_v10 = vadd.f32 %v2563_v4, %v347_v8  ;;  %v2569_v13 = vadd.f32 %v2499_v6, %v188_v9 }
  0xc1   :  { %3553 = vst [vmem:[#allocation9_spill] sm:$0xff] %v2566_v10  ;;  %369 = vmatmul.f32.vlgmr.msra.gmra.mxu2 %v2566_v10  ;;  %v253_v14 = vmul.f32 %v2502_v7, %v2569_v13 }
  0xc3   :  { %281 = vadd.xlane.f32.xlu2 %v253_v14 }
  0xc6   :  { %v191_v15 = vpop.f32.mrf.mxu0 }
  0xc7   :  { %v2575_v16 = vadd.f32 %v2499_v6, %v191_v15 }
  0xc9   :  { %656 = vmatpush.msrb.mxu3 %v2575_v16  ;;  %v254_v22 = vmul.f32 %v2502_v7, %v2575_v16 }
  0xcb   :  { %657 = vmatpush.msrb.mxu3 %v2569_v13  ;;  %283 = vadd.xlane.f32.xlu0 %v254_v22 }
  0xcd   :  { %658 = vmatpush.msrb.mxu3 %v2552_v61 }
  0xce   :  { %v194_v23 = vpop.f32.mrf.mxu0 }
  0xcf   :  { %v2583_v29 = vadd.f32 %v2499_v6, %v194_v23 }
  0xd1   :  { %v255_v34 = vmul.f32 %v2502_v7, %v2583_v29 }
  0xd3   :  { %285 = vadd.xlane.f32.xlu1 %v255_v34 }
  0xd6   :  { %v197_v35 = vpop.f32.mrf.mxu0 }
  0xd7   :  { %v2588_v41 = vadd.f32 %v2499_v6, %v197_v35 }
  0xd9   :  { %v256_v42 = vmul.f32 %v2502_v7, %v2588_v41 }
  0xdb   :  { %287 = vadd.xlane.f32.xlu2 %v256_v42 }
  0xde   :  { %v200_v44 = vpop.f32.mrf.mxu0 }
  0xdf   :  { %v2593_v46 = vadd.f32 %v2499_v6, %v200_v44 }
  0xe1   :  { %v257_v51 = vmul.f32 %v2502_v7, %v2593_v46 }
  0xe3   :  { %289 = vadd.xlane.f32.xlu0 %v257_v51 }
  0xe6   :  { %v203_v0 = vpop.f32.mrf.mxu0 }
  0xe7   :  { %v2598_v2 = vadd.f32 %v2499_v6, %v203_v0 }
  0xe9   :  { %3554 = vst [vmem:[#allocation10_spill] sm:$0xff] %v2598_v2  ;;  %v258_v3 = vmul.f32 %v2502_v7, %v2598_v2 }
  0xeb   :  { %291 = vadd.xlane.f32.xlu1 %v258_v3 }
  0xee   :  { %v206_v8 = vpop.f32.mrf.mxu0 }
  0xef   :  { %v2603_v9 = vadd.f32 %v2499_v6, %v206_v8 }
  0xf1   :  { %3555 = vst [vmem:[#allocation11_spill] sm:$0xff] %v2603_v9  ;;  %v259_v14 = vmul.f32 %v2502_v7, %v2603_v9 }
  0xf3   :  { %293 = vadd.xlane.f32.xlu2 %v259_v14 }
  0xf6   :  { %v209_v15 = vpop.f32.mrf.mxu0 }
  0xf7   :  { %v2608_v22 = vadd.f32 %v2499_v6, %v209_v15 }
  0xf9   :  { %v260_v23 = vmul.f32 %v2502_v7, %v2608_v22 }
  0xfb   :  { %295 = vadd.xlane.f32.xlu0 %v260_v23 }
  0xfe   :  { %v212_v34 = vpop.f32.mrf.mxu0 }
  0xff   :  { %v2613_v35 = vadd.f32 %v2499_v6, %v212_v34 }
 0x101   :  { %3556 = vst [vmem:[#allocation12_spill] sm:$0xff] %v2613_v35  ;;  %v261_v42 = vmul.f32 %v2502_v7, %v2613_v35 }
 0x103   :  { %297 = vadd.xlane.f32.xlu1 %v261_v42 }
 0x106   :  { %v215_v44 = vpop.f32.mrf.mxu0 }
 0x107   :  { %v2618_v51 = vadd.f32 %v2499_v6, %v215_v44 }
 0x109   :  { %3557 = vst [vmem:[#allocation13_spill] sm:$0xff] %v2618_v51  ;;  %v262_v0 = vmul.f32 %v2502_v7, %v2618_v51 }
 0x10b   :  { %299 = vadd.xlane.f32.xlu2 %v262_v0 }
 0x10e   :  { %v218_v3 = vpop.f32.mrf.mxu0 }
 0x10f   :  { %v2623_v8 = vadd.f32 %v2499_v6, %v218_v3 }
 0x111   :  { %3558 = vst [vmem:[#allocation14_spill] sm:$0xff] %v2623_v8  ;;  %v263_v14 = vmul.f32 %v2502_v7, %v2623_v8 }
 0x113   :  { %301 = vadd.xlane.f32.xlu0 %v263_v14 }
 0x116   :  { %v221_v15 = vpop.f32.mrf.mxu0 }
 0x117   :  { %v2628_v23 = vadd.f32 %v2499_v6, %v221_v15 }
 0x119   :  { %3559 = vst [vmem:[#allocation15_spill] sm:$0xff] %v2628_v23  ;;  %v264_v34 = vmul.f32 %v2502_v7, %v2628_v23 }
 0x11b   :  { %303 = vadd.xlane.f32.xlu1 %v264_v34 }
 0x11e   :  { %v224_v42 = vpop.f32.mrf.mxu0 }
 0x11f   :  { %v2633_v44 = vadd.f32 %v2499_v6, %v224_v42 }
 0x121   :  { %3560 = vst [vmem:[#allocation16_spill] sm:$0xff] %v2633_v44  ;;  %v265_v0 = vmul.f32 %v2502_v7, %v2633_v44 }
 0x123   :  { %305 = vadd.xlane.f32.xlu2 %v265_v0 }
 0x126   :  { %v227_v3 = vpop.f32.mrf.mxu0 }
 0x127   :  { %v2638_v12 = vadd.f32 %v2499_v6, %v227_v3 }
 0x129   :  { %3561 = vst [vmem:[#allocation17_spill] sm:$0xff] %v2638_v12  ;;  %744 = vmatpush.msra.mxu1 %v2638_v12  ;;  %v266_v14 = vmul.f32 %v2502_v7, %v2638_v12 }
 0x12b   :  { %745 = vmatpush.msra.mxu1 %v2633_v44  ;;  %307 = vadd.xlane.f32.xlu0 %v266_v14  ;;  %v2662_v14 = vld [vmem:[%s3466_s6] ss:$0 sm:$0xff] }
 0x12c   :  { %3564 = vst [vmem:[#allocation20_spill] sm:$0xff] %v2662_v14 }
 0x12d   :  { %746 = vmatpush.msra.mxu1 %v2628_v23 }
 0x12e   :  { %v230_v15 = vpop.f32.mrf.mxu0 }
 0x12f   :  { %v2646_v34 = vadd.f32 %v2499_v6, %v230_v15 }
 0x131   :  { %3562 = vst [vmem:[#allocation18_spill] sm:$0xff] %v2646_v34  ;;  %v267_v42 = vmul.f32 %v2502_v7, %v2646_v34 }
 0x133   :  { %309 = vadd.xlane.f32.xlu1 %v267_v42 }
 0x136   :  { %v233_v0 = vpop.f32.mrf.mxu0 }
 0x137   :  { %v2651_v3 = vadd.f32 %v2499_v6, %v233_v0  ;;  %v2666_v6 = vperm.slane %v2494_v5, 1 }
 0x139   :  { %3563 = vst [vmem:[#allocation19_spill] sm:$0xff] %v2651_v3  ;;  %v268_v12 = vmul.f32 %v2502_v7, %v2651_v3  ;;  %767 = vmatpush.msrb.mxu2 %v2651_v3 }
 0x13a   :  { %3565 = vst [vmem:[#allocation21_spill] sm:$0xff] %v2666_v6 }
 0x13b   :  { %311 = vadd.xlane.f32.xlu2 %v268_v12  ;;  %768 = vmatpush.msrb.mxu2 %v2646_v34 }
 0x13d   :  { %842 = vmatpush.msra.mxu2 %v2245_v18 }
 0x13f   :  { %843 = vmatpush.msra.mxu2 %v2250_v19  ;;  %v2683_v19 = vpop.xlane.xlu0 %273 }
 0x140   :  { %3566 = vst [vmem:[#allocation22_spill] sm:$0xff] %v2683_v19 }
 0x141   :  { %844 = vmatpush.msra.mxu2 %v2256_v20 }
 0x143   :  { %845 = vmatpush.msra.mxu2 %v2262_v21 }
 0x144   :  { %v370_v7 = vpop.f32.mrf.mxu2 }
 0x145   :  { %v371_v12 = vadd.f32 %v2662_v14, %v370_v7  ;;  %846 = vmatpush.msra.mxu2 %v2274_v24 }
 0x147   :  { %v374_v18 = vmul.f32 %v2666_v6, %v371_v12  ;;  %847 = vmatpush.msra.mxu2 %v2280_v25  ;;  %v2685_v20 = vpop.xlane.xlu0 %313 }
 0x148   :  { %3567 = vst [vmem:[#allocation23_spill] sm:$0xff] %v2685_v20 }
 0x149   :  { %375 = vadd.xlane.f32.xlu0 %v374_v18  ;;  %848 = vmatpush.msra.mxu2 %v2286_v26  ;;  %v2693_v26 = vpop.xlane.xlu1 %275 }
 0x14a   :  { %3571 = vst [vmem:[#allocation27_spill] sm:$0xff] %v2693_v26 }
 0x14b   :  { %849 = vmatpush.msra.mxu2 %v2292_v27 }
 0x14d   :  { %850 = vmatpush.msra.mxu2 %v2304_v30  ;;  %v2112_v30 = vmov 0  }
 0x14e   :  { %1899 = vset.pattern.permute.xlu0 %v2112_v30  ;;  %1898 = vset.pattern.permute.xlu2 %v2112_v30 }
 0x14f   :  { %851 = vmatpush.msra.mxu2 %v2310_v31  ;;  %v2687_v21 = vpop.xlane.xlu0 %319  ;;  %1897 = vset.pattern.permute.xlu1 %v2112_v30 }
 0x150   :  { %3568 = vst [vmem:[#allocation24_spill] sm:$0xff] %v2687_v21 }
 0x151   :  { %852 = vmatpush.msra.mxu2 %v2316_v32  ;;  %v2697_v31 = vpop.xlane.xlu1 %315 }
 0x152   :  { %3573 = vst [vmem:[#allocation29_spill] sm:$0xff] %v2697_v31 }
 0x153   :  { %853 = vmatpush.msra.mxu2 %v2322_v33 }
 0x155   :  { %854 = vmatpush.msra.mxu2 %v2334_v36 }
 0x157   :  { %855 = vmatpush.msra.mxu2 %v2340_v37  ;;  %v2689_v24 = vpop.xlane.xlu0 %283  ;;  %v2705_v37 = vpop.xlane.xlu2 %277 }
 0x158   :  { %3569 = vst [vmem:[#allocation25_spill] sm:$0xff] %v2689_v24 }
 0x159   :  { %856 = vmatpush.msra.mxu2 %v2346_v38  ;;  %v2701_v33 = vpop.xlane.xlu1 %279  ;;  %3577 = vst [vmem:[#allocation33_spill] sm:$0xff] %v2705_v37 }
 0x15a   :  { %3575 = vst [vmem:[#allocation31_spill] sm:$0xff] %v2701_v33 }
 0x15b   :  { %857 = vmatpush.msra.mxu2 %v2352_v39 }
 0x15f   :  { %v2691_v25 = vpop.xlane.xlu0 %289  ;;  %v2710_v0 = vpop.xlane.xlu2 %317 }
 0x160   :  { %3570 = vst [vmem:[#allocation26_spill] sm:$0xff] %v2691_v25 }
 0x161   :  { %v2707_v38 = vpop.xlane.xlu1 %285  ;;  %3579 = vst [vmem:[#allocation35_spill] sm:$0xff] %v2710_v0 }
 0x162   :  { %3578 = vst [vmem:[#allocation34_spill] sm:$0xff] %v2707_v38 }
 0x167   :  { %v2717_v6 = vpop.xlane.xlu2 %281 }
 0x168   :  { %3581 = vst [vmem:[#allocation37_spill] sm:$0xff] %v2717_v6 }
 0x169   :  { %v2713_v18 = vpop.xlane.xlu1 %291 }
 0x16a   :  { %3580 = vst [vmem:[#allocation36_spill] sm:$0xff] %v2713_v18 }
 0x16e   :  { %v2695_v27 = vpop.xlane.xlu0 %295 }
 0x16f   :  { %3572 = vst [vmem:[#allocation28_spill] sm:$0xff] %v2695_v27 }
 0x176   :  { %v2720_v23 = vpop.xlane.xlu1 %297 }
 0x177   :  { %3582 = vst [vmem:[#allocation38_spill] sm:$0xff] %v2720_v23 }
 0x186   :  { %v2699_v32 = vpop.xlane.xlu0 %301 }
 0x187   :  { %3574 = vst [vmem:[#allocation30_spill] sm:$0xff] %v2699_v32 }
 0x19e   :  { %v2703_v36 = vpop.xlane.xlu0 %307 }
 0x19f   :  { %3576 = vst [vmem:[#allocation32_spill] sm:$0xff] %v2703_v36 }
 0x1bc   :  { %v376_v39 = vpop.xlane.xlu0 %375 }
 0x1bd   :  { %v378_v5 = vperm.slane %v376_v39, 0  ;;  %v379_v15 = vperm.slane %v376_v39, 1  ;;  %v381_v7 = vperm.slane %v376_v39, 3  ;;  %v382_v14 = vperm.slane %v376_v39, 4 }
 0x1bf   :  { %v397_v42 = vadd.f32 %v379_v15, %v2701_v33  ;;  %v395_v12 = vadd.f32 %v378_v5, %v2693_v26  ;;  %v394_v30 = vadd.f32 %v378_v5, %v2683_v19  ;;  %v403_v34 = vadd.f32 %v381_v7, %v2713_v18 }
 0x1c0   :  { %v398_v33 = vadd.f32 %v379_v15, %v2717_v6  ;;  %v2725_v6 = vpop.xlane.xlu1 %303 }
 0x1c1   :  { %1905 = vtanh.f32 %v397_v42  ;;  %v396_v42 = vadd.f32 %v378_v5, %v2705_v37  ;;  %3583 = vst [vmem:[#allocation39_spill] sm:$0xff] %v2725_v6 }
 0x1c2   :  { %1907 = vtanh.f32 %v395_v12  ;;  %v406_v12 = vadd.f32 %v382_v14, %v2720_v23 }
 0x1c3   :  { %1909 = vtanh.f32 %v394_v30  ;;  %v380_v30 = vperm.slane %v376_v39, 2 }
 0x1c4   :  { %1911 = vtanh.f32 %v403_v34  ;;  %v399_v34 = vadd.f32 %v379_v15, %v2689_v24 }
 0x1c5   :  { %1913 = vtanh.f32 %v398_v33  ;;  %v400_v19 = vadd.f32 %v380_v30, %v2707_v38 }
 0x1c6   :  { %1915 = vtanh.f32 %v396_v42 }
 0x1c7   :  { %v1906_v3 = vpop.eup %1905  ;;  %1917 = vtanh.f32 %v406_v12  ;;  %v402_v12 = vadd.f32 %v380_v30, %v2691_v25 }
 0x1c8   :  { %476 = vperm.xlu0 %1899, %v1906_v3   ;;  %v1908_v26 = vpop.eup %1907  ;;  %v383_v3 = vperm.slane %v376_v39, 5  ;;  %1919 = vtanh.f32 %v399_v34  ;;  %v2732_v42 = vpop.xlane.xlu1 %309 }
 0x1c9   :  { %v1910_v44 = vpop.eup %1909  ;;  %470 = vperm.xlu2 %1898, %v1908_v26   ;;  %v2729_v26 = vpop.xlane.xlu2 %287  ;;  %1921 = vtanh.f32 %v400_v19  ;;  %3585 = vst [vmem:[#allocation41_spill] sm:$0xff] %v2732_v42 }
 0x1ca   :  { %467 = vperm.xlu1 %1897, %v1910_v44   ;;  %v1912_v18 = vpop.eup %1911  ;;  %v409_v44 = vadd.f32 %v383_v3, %v2725_v6  ;;  %3584 = vst [vmem:[#allocation40_spill] sm:$0xff] %v2729_v26  ;;  %v401_v15 = vadd.f32 %v380_v30, %v2729_v26 }
 0x1cb   :  { %v1914_v5 = vpop.eup %1913 }
 0x1cc   :  { %v1916_v37 = vpop.eup %1915  ;;  %1923 = vtanh.f32 %v409_v44 }
 0x1cd   :  { %v1918_v33 = vpop.eup %1917  ;;  %1925 = vtanh.f32 %v401_v15 }
 0x1ce   :  { %v1920_v23 = vpop.eup %1919  ;;  %1927 = vtanh.f32 %v402_v12  ;;  %v408_v12 = vadd.f32 %v382_v14, %v2699_v32 }
 0x1cf   :  { %v1922_v38 = vpop.eup %1921 }
 0x1d0   :  { %494 = vperm.xlu0 %1899, %v1912_v18   ;;  %v384_v18 = vperm.slane %v376_v39, 6 }
 0x1d1   :  { %479 = vperm.xlu2 %1898, %v1914_v5   ;;  %v2736_v34 = vpop.xlane.xlu2 %293  ;;  %v385_v5 = vperm.slane %v376_v39, 7 }
 0x1d2   :  { %473 = vperm.xlu1 %1897, %v1916_v37   ;;  %v412_v37 = vadd.f32 %v384_v18, %v2732_v42  ;;  %3586 = vst [vmem:[#allocation42_spill] sm:$0xff] %v2736_v34  ;;  %v1924_v19 = vpop.eup %1923  ;;  %v404_v44 = vadd.f32 %v381_v7, %v2736_v34 }
 0x1d3   :  { %v1926_v6 = vpop.eup %1925 }
 0x1d4   :  { %1929 = vtanh.f32 %v412_v37  ;;  %v1928_v30 = vpop.eup %1927 }
 0x1d5   :  { %1931 = vtanh.f32 %v404_v44 }
 0x1d8   :  { %503 = vperm.xlu0 %1899, %v1918_v33   ;;  %v405_v33 = vadd.f32 %v381_v7, %v2695_v27 }
 0x1d9   :  { %482 = vperm.xlu2 %1898, %v1920_v23   ;;  %v415_v23 = vadd.f32 %v385_v5, %v2697_v31 }
 0x1da   :  { %485 = vperm.xlu1 %1897, %v1922_v38   ;;  %v2741_v38 = vpop.xlane.xlu2 %299  ;;  %1933 = vtanh.f32 %v405_v33  ;;  %v1930_v15 = vpop.eup %1929  ;;  %v411_v33 = vadd.f32 %v383_v3, %v2703_v36 }
 0x1db   :  { %3587 = vst [vmem:[#allocation43_spill] sm:$0xff] %v2741_v38  ;;  %1935 = vtanh.f32 %v415_v23  ;;  %v407_v39 = vadd.f32 %v382_v14, %v2741_v38  ;;  %v1932_v37 = vpop.eup %1931 }
 0x1dd   :  { %1937 = vtanh.f32 %v407_v39  ;;  %v414_v39 = vadd.f32 %v384_v18, %v2685_v20 }
 0x1de   :  { %1939 = vtanh.f32 %v408_v12 }
 0x1e0   :  { %512 = vperm.xlu0 %1899, %v1924_v19   ;;  %v1934_v19 = vpop.eup %1933 }
 0x1e1   :  { %488 = vperm.xlu2 %1898, %v1926_v6   ;;  %v1936_v7 = vpop.eup %1935 }
 0x1e2   :  { %491 = vperm.xlu1 %1897, %v1928_v30   ;;  %v2745_v6 = vpop.xlane.xlu2 %305 }
 0x1e3   :  { %3588 = vst [vmem:[#allocation44_spill] sm:$0xff] %v2745_v6  ;;  %v410_v44 = vadd.f32 %v383_v3, %v2745_v6  ;;  %v1938_v30 = vpop.eup %1937  ;;  %v416_v3 = vadd.f32 %v385_v5, %v2710_v0  ;;  %v321_v6 = vlaneseq }
 0x1e4   :  { %v1940_v23 = vpop.eup %1939 }
 0x1e5   :  { %1941 = vtanh.f32 %v410_v44 }
 0x1e6   :  { %1943 = vtanh.f32 %v411_v33 }
 0x1e8   :  { %521 = vperm.xlu0 %1899, %v1930_v15  }
 0x1e9   :  { %497 = vperm.xlu2 %1898, %v1932_v37  }
 0x1ea   :  { %500 = vperm.xlu1 %1897, %v1934_v19   ;;  %v2749_v14 = vpop.xlane.xlu2 %311  ;;  %v417_v19 = vadd.f32 %v385_v5, %v2687_v21 }
 0x1eb   :  { %3589 = vst [vmem:[#allocation45_spill] sm:$0xff] %v2749_v14  ;;  %v413_v15 = vadd.f32 %v384_v18, %v2749_v14  ;;  %v1942_v37 = vpop.eup %1941 }
 0x1ec   :  { %v1944_v12 = vpop.eup %1943 }
 0x1ed   :  { %1945 = vtanh.f32 %v413_v15 }
 0x1ee   :  { %1947 = vtanh.f32 %v414_v39 }
 0x1ef   :  { %1949 = vtanh.f32 %v416_v3 }
 0x1f0   :  { %530 = vperm.xlu0 %1899, %v1936_v7   ;;  %1951 = vtanh.f32 %v417_v19 }
 0x1f1   :  { %506 = vperm.xlu2 %1898, %v1938_v30  }
 0x1f2   :  { %509 = vperm.xlu1 %1897, %v1940_v23  }
 0x1f3   :  { %v1946_v7 = vpop.eup %1945 }
 0x1f4   :  { %v1948_v30 = vpop.eup %1947 }
 0x1f5   :  { %v1950_v44 = vpop.eup %1949 }
 0x1f6   :  { %v1952_v33 = vpop.eup %1951 }
 0x1f9   :  { %515 = vperm.xlu2 %1898, %v1942_v37  }
 0x1fa   :  { %518 = vperm.xlu1 %1897, %v1944_v12  }
 0x201   :  { %524 = vperm.xlu2 %1898, %v1946_v7  }
 0x202   :  { %527 = vperm.xlu1 %1897, %v1948_v30  }
 0x209   :  { %533 = vperm.xlu2 %1898, %v1950_v44   ;;  %v2755_v44 = vand.u32 127, %v321_v6 }
 0x20a   :  { %536 = vperm.xlu1 %1897, %v1952_v33  }
 0x20b   :  { %v2758_v36 = vadd.s32 4294967288, %v2755_v44  ;;  %v2761_v34 = vadd.s32 4294967280, %v2755_v44 }
 0x223   :  { %v471_v18 = vpop.permute.xlu2 %470 }
 0x224   :  { %v540_v25 = vperm.slane %v471_v18, %v2758_v36 }
 0x22b   :  { %v480_v23 = vpop.permute.xlu2 %479 }
 0x22c   :  { %v548_v24 = vperm.slane %v480_v23, %v2758_v36 }
 0x233   :  { %v483_v37 = vpop.permute.xlu2 %482 }
 0x234   :  { %v550_v6 = vperm.slane %v483_v37, %v2761_v34 }
 0x23a   :  { %v477_v39 = vpop.permute.xlu0 %476 }
 0x23b   :  { %v489_v31 = vpop.permute.xlu2 %488  ;;  %v547_v27 = vperm.slane %v477_v39, %v2755_v44 }
 0x23c   :  { %v468_v15 = vpop.permute.xlu1 %467  ;;  %v553_v63 = vperm.slane %v489_v31, %v2758_v36 }
 0x23d   :  { %v538_v26 = vperm.slane %v468_v15, %v2755_v44  ;;  %v549_v1 = vsel %vm541_vm0, %v548_v24, %v547_v27 }
 0x23e   :  { %v551_v31 = vsel %vm545_vm1, %v550_v6, %v549_v1 }
 0x23f   :  { %v542_v15 = vsel %vm541_vm0, %v540_v25, %v538_v26 }
 0x242   :  { %v495_v14 = vpop.permute.xlu0 %494 }
 0x243   :  { %v498_v5 = vpop.permute.xlu2 %497  ;;  %v557_v18 = vperm.slane %v495_v14, %v2755_v44 }
 0x244   :  { %v474_v12 = vpop.permute.xlu1 %473  ;;  %v558_v23 = vperm.slane %v498_v5, %v2758_v36 }
 0x245   :  { %v544_v4 = vperm.slane %v474_v12, %v2761_v34 }
 0x24a   :  { %v504_v42 = vpop.permute.xlu0 %503 }
 0x24b   :  { %v507_v7 = vpop.permute.xlu2 %506  ;;  %v562_v37 = vperm.slane %v504_v42, %v2755_v44 }
 0x24c   :  { %v486_v0 = vpop.permute.xlu1 %485  ;;  %v563_v12 = vperm.slane %v507_v7, %v2758_v36 }
 0x24d   :  { %v552_v10 = vperm.slane %v486_v0, %v2755_v44 }
 0x24f   :  { %v554_v25 = vsel %vm541_vm0, %v553_v63, %v552_v10 }
 0x252   :  { %v513_v3 = vpop.permute.xlu0 %512 }
 0x253   :  { %v516_v19 = vpop.permute.xlu2 %515  ;;  %v567_v0 = vperm.slane %v513_v3, %v2755_v44 }
 0x254   :  { %v492_v21 = vpop.permute.xlu1 %491  ;;  %v568_v24 = vperm.slane %v516_v19, %v2758_v36 }
 0x255   :  { %v555_v39 = vperm.slane %v492_v21, %v2761_v34  ;;  %v546_v21 = vsel %vm545_vm1, %v544_v4, %v542_v15  ;;  %v564_v4 = vsel %vm541_vm0, %v563_v12, %v562_v37  ;;  %v324_v15 = vstv %s3467_s0 }
 0x256   :  { %v583_v63 = vsel %vm582_vm2, %v551_v31, %v546_v21  ;;  %v569_v10 = vsel %vm541_vm0, %v568_v24, %v567_v0  ;;  %vm2810_vm9 = vcmp.lt.s32.totalorder %v2755_v44, %v324_v15  ;;  %v2887_v15 = vld [vmem:[%s3468_s8 + $0x28] sm:$0xff] }
 0x257   :  { %v556_v14 = vsel %vm545_vm1, %v555_v39, %v554_v25 }
 0x25a   :  { %v522_v38 = vpop.permute.xlu0 %521 }
 0x25b   :  { %v525_v32 = vpop.permute.xlu2 %524  ;;  %v572_v42 = vperm.slane %v522_v38, %v2755_v44 }
 0x25c   :  { %v501_v30 = vpop.permute.xlu1 %500  ;;  %v573_v5 = vperm.slane %v525_v32, %v2758_v36  ;;  %v585_v32 = vsel %vm584_vm3, %v556_v14, %v583_v63  ;;  %v2859_v63 = vld [vmem:[%s3468_s8 + $0x48] sm:$0xff] }
 0x25d   :  { %v560_v27 = vperm.slane %v501_v30, %v2761_v34  ;;  %v559_v30 = vsel %vm541_vm0, %v558_v23, %v557_v18 }
 0x25e   :  { %v574_v39 = vsel %vm541_vm0, %v573_v5, %v572_v42  ;;  %v2824_v5 = vld [vmem:[%s3468_s8 + $0x78] sm:$0xff] }
 0x25f   :  { %821 = vmatpush.msrb.mxu1 %v2824_v5 }
 0x262   :  { %v531_v7 = vpop.permute.xlu0 %530 }
 0x263   :  { %v534_v3 = vpop.permute.xlu2 %533  ;;  %v577_v38 = vperm.slane %v531_v7, %v2755_v44  ;;  %v2829_v7 = vld [vmem:[%s3468_s8 + $0x70] sm:$0xff] }
 0x264   :  { %v510_v20 = vpop.permute.xlu1 %509  ;;  %822 = vmatpush.msrb.mxu1 %v2829_v7 }
 0x265   :  { %v565_v26 = vperm.slane %v510_v20, %v2761_v34  ;;  %v561_v20 = vsel %vm545_vm1, %v560_v27, %v559_v30  ;;  %v2847_v30 = vld [vmem:[%s3468_s8 + $0x58] sm:$0xff] }
 0x266   :  { %v587_v18 = vsel %vm586_vm4, %v561_v20, %v585_v32  ;;  %v2877_v20 = vld [vmem:[%s3468_s8 + $0x30] sm:$0xff]  ;;  %v2095_v27 = vld [vmem:[%s3468_s8 + $0x78] sm:$0xff] }
 0x267   :  { %v566_v6 = vsel %vm545_vm1, %v565_v26, %v564_v4  ;;  %v2865_v4 = vld [vmem:[%s3468_s8 + $0x40] sm:$0xff] }
 0x268   :  { %v589_v12 = vsel %vm588_vm5, %v566_v6, %v587_v18  ;;  %v2892_v18 = vld [vmem:[%s3468_s8 + $0x20] sm:$0xff] }
 0x26c   :  { %v519_v33 = vpop.permute.xlu1 %518 }
 0x26d   :  { %v570_v19 = vperm.slane %v519_v33, %v2761_v34  ;;  %v578_v33 = vperm.slane %v534_v3, %v2758_v36  ;;  %v2835_v3 = vld [vmem:[%s3468_s8 + $0x68] sm:$0xff] }
 0x26e   :  { %823 = vmatpush.msrb.mxu1 %v2835_v3 }
 0x26f   :  { %v579_v24 = vsel %vm541_vm0, %v578_v33, %v577_v38 }
 0x274   :  { %v528_v62 = vpop.permute.xlu1 %527 }
 0x275   :  { %v575_v1 = vperm.slane %v528_v62, %v2761_v34  ;;  %v571_v62 = vsel %vm545_vm1, %v570_v19, %v569_v10  ;;  %v2841_v19 = vld [vmem:[%s3468_s8 + $0x60] sm:$0xff]  ;;  %v2871_v10 = vld [vmem:[%s3468_s8 + $0x38] sm:$0xff] }
 0x276   :  { %v591_v31 = vsel %vm590_vm6, %v571_v62, %v589_v12  ;;  %824 = vmatpush.msrb.mxu1 %v2841_v19  ;;  %v2910_v12 = vld [vmem:[%s3468_s8 + $0x8] sm:$0xff] }
 0x277   :  { %v576_v23 = vsel %vm545_vm1, %v575_v1, %v574_v39  ;;  %v2853_v1 = vld [vmem:[%s3468_s8 + $0x50] sm:$0xff] }
 0x278   :  { %v593_v25 = vsel %vm592_vm7, %v576_v23, %v591_v31  ;;  %825 = vmatpush.msrb.mxu1 %v2847_v30  ;;  %v2898_v23 = vld [vmem:[%s3468_s8 + $0x18] sm:$0xff] }
 0x27a   :  { %826 = vmatpush.msrb.mxu1 %v2853_v1 }
 0x27c   :  { %v537_v37 = vpop.permute.xlu1 %536  ;;  %827 = vmatpush.msrb.mxu1 %v2859_v63 }
 0x27d   :  { %v580_v0 = vperm.slane %v537_v37, %v2761_v34  ;;  %v2904_v37 = vld [vmem:[%s3468_s8 + $0x10] sm:$0xff] }
 0x27e   :  { %828 = vmatpush.msrb.mxu1 %v2865_v4 }
 0x27f   :  { %v581_v21 = vsel %vm545_vm1, %v580_v0, %v579_v24  ;;  %v2916_v0 = vld [vmem:[%s3468_s8] sm:$0xff] }
 0x280   :  { %v595_v26 = vsel %vm594_vm8, %v581_v21, %v593_v25  ;;  %829 = vmatpush.msrb.mxu1 %v2871_v10 }
 0x281   :  { %v597_v14 = vsel %vm2810_vm9, %v595_v26, -1e+30 }
 0x282   :  { %v599_v42 = vsel %vm598_vm10, %v597_v14, -inf  ;;  %830 = vmatpush.msrb.mxu1 %v2877_v20 }
 0x283   :  { %600 = vmax.xlane.f32.xlu0 %v599_v42 }
 0x284   :  { %831 = vmatpush.msrb.mxu1 %v2887_v15 }
 0x286   :  { %832 = vmatpush.msrb.mxu1 %v2892_v18 }
 0x288   :  { %833 = vmatpush.msrb.mxu1 %v2898_v23 }
 0x28a   :  { %834 = vmatpush.msrb.mxu1 %v2904_v37 }
 0x28c   :  { %835 = vmatpush.msrb.mxu1 %v2910_v12 }
 0x28e   :  { %836 = vmatpush.msrb.mxu1 %v2916_v0 }
 0x2f6   :  { %v601_v32 = vpop.xlane.xlu0 %600 }
 0x2f7   :  { %v602_v38 = vsub.f32 %v597_v14, %v601_v32 }
 0x2f9   :  { %v603_v33 = vmul.f32 1.442695, %v602_v38 }
 0x2fb   :  { %1953 = vpow2.f32 %v603_v33 }
 0x301   :  { %v1954_v6 = vpop.eup %1953 }
 0x302   :  { %v605_v39 = vsel %vm2810_vm9, %v1954_v6, 0.0 }
 0x303   :  { %v606_v62 = vsel %vm598_vm10, %v605_v39, 0.0 }
 0x304   :  { %607 = vadd.xlane.f32.xlu2 %v606_v62 }
 0x377   :  { %v608_v24 = vpop.xlane.xlu2 %607 }
 0x378   :  { %1955 = vrcp.f32 %v608_v24 }
 0x37e   :  { %v1956_v31 = vpop.eup %1955 }
 0x37f   :  { %v610_v21 = vmul.f32 %v1956_v31, %v605_v39 }
 0x381   :  { %1856 = vmatmul.msk.f32.vlgmr.msra.gmra.mxu3 %vm598_vm10, %v610_v21  ;;  %v616_v25 = vrot.slane %v610_v21, 5  ;;  %v617_v26 = vrot.slane %v610_v21, 6  ;;  %v612_v14 = vrot.slane %v610_v21, 1  ;;  %v613_v42 = vrot.slane %v610_v21, 2 }
 0x382   :  { %678 = vmatpush.msra.mxu3 %v2593_v46  ;;  %v614_v32 = vrot.slane %v610_v21, 3  ;;  %v615_v38 = vrot.slane %v610_v21, 4  ;;  %v618_v33 = vrot.slane %v610_v21, 7 }
 0x383   :  { %1861 = vmatmul.msk.f32.vlgmr.msra.gmra.mxu1 %vm598_vm10, %v616_v25  ;;  %1862 = vmatmul.msk.f32.vlgmr.msrb.gmra.mxu2 %vm598_vm10, %v617_v26 }
 0x384   :  { %679 = vmatpush.msra.mxu3 %v2588_v41  ;;  %1130 = vmatpush.msra.mxu1 %v2533_v40 }
 0x385   :  { %1152 = vmatpush.msrb.mxu2 %v2575_v16 }
 0x386   :  { %680 = vmatpush.msra.mxu3 %v2583_v29  ;;  %1131 = vmatpush.msra.mxu1 %v2520_v17 }
 0x387   :  { %1153 = vmatpush.msrb.mxu2 %v2569_v13 }
 0x388   :  { %1132 = vmatpush.msra.mxu1 %v2508_v11 }
 0x389   :  { %1154 = vmatpush.msrb.mxu2 %v2552_v61  ;;  %1857 = vmatmul.msk.f32.vlgmr.msrb.gmra.mxu3 %vm598_vm10, %v612_v14 }
 0x38a   :  { %700 = vmatpush.msrb.mxu3 %v2608_v22 }
 0x38c   :  { %701 = vmatpush.msrb.mxu3 %v2603_v9 }
 0x38e   :  { %702 = vmatpush.msrb.mxu3 %v2598_v2 }
 0x391   :  { %1858 = vmatmul.msk.f32.vlgmr.msra.gmra.mxu3 %vm598_vm10, %v613_v42 }
 0x392   :  { %722 = vmatpush.msra.mxu3 %v2623_v8 }
 0x394   :  { %723 = vmatpush.msra.mxu3 %v2618_v51 }
 0x396   :  { %724 = vmatpush.msra.mxu3 %v2613_v35 }
 0x399   :  { %1859 = vmatmul.msk.f32.vlgmr.msrb.gmra.mxu3 %vm598_vm10, %v614_v32 }
 0x39a   :  { %788 = vmatpush.msrb.mxu3 %v2549_v56 }
 0x39c   :  { %789 = vmatpush.msrb.mxu3 %v2542_v43 }
 0x39e   :  { %790 = vmatpush.msrb.mxu3 %v2527_v28 }
 0x3a1   :  { %1860 = vmatmul.msk.f32.vlgmr.msra.gmra.mxu3 %vm598_vm10, %v615_v38 }
 0x3a2   :  { %862 = vmatpush.msra.mxu3 %v2374_v45  ;;  %v3592_v45 = vld [vmem:[#allocation4_spill] sm:$0xff] }
 0x3a4   :  { %863 = vmatpush.msra.mxu3 %v2383_v47  ;;  %v3593_v47 = vld [vmem:[#allocation5_spill] sm:$0xff] }
 0x3a6   :  { %864 = vmatpush.msra.mxu3 %v2388_v48  ;;  %v3594_v48 = vld [vmem:[#allocation6_spill] sm:$0xff] }
 0x3a8   :  { %865 = vmatpush.msra.mxu3 %v2394_v49 }
 0x3a9   :  { %1863 = vmatmul.msk.f32.vlgmr.msrb.gmra.mxu3 %vm598_vm10, %v618_v33  ;;  %v2978_v33 = vld [vmem:[%s3469_s9] ss:$0 sm:$0xff] }
 0x3aa   :  { %866 = vmatpush.msra.mxu3 %v2400_v50  ;;  %3595 = vst [vmem:[#allocation4_spill] sm:$0xff] %v2978_v33 }
 0x3ac   :  { %867 = vmatpush.msra.mxu3 %v2410_v52 }
 0x3ae   :  { %868 = vmatpush.msra.mxu3 %v2415_v53 }
 0x3b0   :  { %869 = vmatpush.msra.mxu3 %v2421_v54 }
 0x3b2   :  { %870 = vmatpush.msra.mxu3 %v2427_v55 }
 0x3b4   :  { %871 = vmatpush.msra.mxu3 %v2437_v57 }
 0x3b6   :  { %872 = vmatpush.msra.mxu3 %v2442_v58 }
 0x3b8   :  { %873 = vmatpush.msra.mxu3 %v2448_v59 }
 0x3ba   :  { %874 = vmatpush.msra.mxu3 %v2454_v60 }
 0x3bc   :  { %875 = vmatpush.msra.mxu3 %v3592_v45 }
 0x3be   :  { %876 = vmatpush.msra.mxu3 %v3593_v47 }
 0x3c0   :  { %877 = vmatpush.msra.mxu3 %v3594_v48  ;;  %v3596_v48 = vld [vmem:[#allocation9_spill] sm:$0xff] }
 0x3c2   :  { %1174 = vmatpush.msrb.mxu3 %v2593_v46 }
 0x3c4   :  { %1175 = vmatpush.msrb.mxu3 %v2588_v41 }
 0x3c6   :  { %1176 = vmatpush.msrb.mxu3 %v2583_v29 }
 0x400   :  { %v748_v6 = vpop.f32.mrf.mxu1 }
 0x401   :  { %v814_v31 = vrot.slane %v748_v6, 3  ;;  %v3603_v6 = vld [vmem:[#allocation21_spill] sm:$0xff] }
 0x404   :  { %v638_v49 = vpop.f32.mrf.mxu3 }
 0x406   :  { %v770_v21 = vpop.f32.mrf.mxu2 }
 0x407   :  { %v816_v26 = vrot.slane %v770_v21, 2  ;;  %v3604_v21 = vld [vmem:[#allocation31_spill] sm:$0xff] }
 0x40c   :  { %v660_v50 = vpop.f32.mrf.mxu3 }
 0x40d   :  { %v806_v54 = vrot.slane %v660_v50, 7 }
 0x40f   :  { %v807_v59 = vsel %vm582_vm2, %v806_v54, %v638_v49  ;;  %v3599_v54 = vld [vmem:[#allocation17_spill] sm:$0xff] }
 0x414   :  { %v682_v52 = vpop.f32.mrf.mxu3 }
 0x415   :  { %v808_v55 = vrot.slane %v682_v52, 6  ;;  %v3597_v52 = vld [vmem:[#allocation8_spill] sm:$0xff] }
 0x417   :  { %v809_v39 = vsel %vm584_vm3, %v808_v55, %v807_v59  ;;  %v3600_v55 = vld [vmem:[#allocation16_spill] sm:$0xff] }
 0x418   :  { %v3602_v59 = vld [vmem:[#allocation20_spill] sm:$0xff] }
 0x41c   :  { %v704_v53 = vpop.f32.mrf.mxu3 }
 0x41d   :  { %v810_v57 = vrot.slane %v704_v53, 5 }
 0x41f   :  { %v811_v62 = vsel %vm586_vm4, %v810_v57, %v809_v39  ;;  %v3601_v57 = vld [vmem:[#allocation15_spill] sm:$0xff] }
 0x424   :  { %v726_v58 = vpop.f32.mrf.mxu3 }
 0x425   :  { %v812_v60 = vrot.slane %v726_v58, 4 }
 0x427   :  { %v813_v24 = vsel %vm588_vm5, %v812_v60, %v811_v62 }
 0x428   :  { %v815_v25 = vsel %vm590_vm6, %v814_v31, %v813_v24 }
 0x429   :  { %v817_v32 = vsel %vm592_vm7, %v816_v26, %v815_v25  ;;  %v3605_v26 = vld [vmem:[#allocation27_spill] sm:$0xff] }
 0x42c   :  { %v792_v14 = vpop.f32.mrf.mxu3 }
 0x42d   :  { %v818_v42 = vrot.slane %v792_v14, 1 }
 0x42f   :  { %v819_v38 = vsel %vm594_vm8, %v818_v42, %v817_v32  ;;  %v3606_v42 = vld [vmem:[#allocation22_spill] sm:$0xff] }
 0x430   :  { %837 = vmatmul.f32.vlgmr.msrb.gmra.mxu1 %v819_v38  ;;  %v3607_v38 = vld [vmem:[#allocation25_spill] sm:$0xff] }
 0x431   :  { %1196 = vmatpush.msrb.mxu1 %v2608_v22 }
 0x433   :  { %1197 = vmatpush.msrb.mxu1 %v2603_v9 }
 0x435   :  { %1198 = vmatpush.msrb.mxu1 %v2598_v2 }
 0x4ad   :  { %v838_v45 = vpop.f32.mrf.mxu1 }
 0x4ae   :  { %v839_v47 = vadd.f32 %v2978_v33, %v838_v45 }
 0x4b0   :  { %v841_v49 = vadd.f32 %v839_v47, %v3596_v48  ;;  %v3608_v47 = vld [vmem:[#allocation37_spill] sm:$0xff] }
 0x4b2   :  { %858 = vmatmul.f32.vlgmr.msra.gmra.mxu2 %v841_v49 }
 0x4b3   :  { %1218 = vmatpush.msra.mxu2 %v2623_v8 }
 0x4b5   :  { %1219 = vmatpush.msra.mxu2 %v2618_v51 }
 0x4b7   :  { %1220 = vmatpush.msra.mxu2 %v2613_v35 }
 0x535   :  { %v859_v50 = vpop.f32.mrf.mxu2 }
 0x536   :  { %v2986_v53 = vadd.f32 %v3597_v52, %v859_v50  ;;  %v3609_v50 = vld [vmem:[#allocation33_spill] sm:$0xff] }
 0x538   :  { %3598 = vst [vmem:[#allocation5_spill] sm:$0xff] %v2986_v53  ;;  %878 = vmatmul.f32.vlgmr.msra.gmra.mxu3 %v2986_v53 }
 0x539   :  { %1240 = vmatpush.msra.mxu3 %v3599_v54 }
 0x53b   :  { %1241 = vmatpush.msra.mxu3 %v3600_v55 }
 0x53d   :  { %1242 = vmatpush.msra.mxu3 %v3601_v57 }
 0x5bb   :  { %v879_v58 = vpop.f32.mrf.mxu3 }
 0x5bc   :  { %v880_v60 = vadd.f32 %v3602_v59, %v879_v58 }
 0x5be   :  { %v882_v39 = vmul.f32 %v880_v60, %v3603_v6 }
 0x5c0   :  { %883 = vadd.xlane.f32.xlu1 %v882_v39  ;;  %v3610_v39 = vld [vmem:[#allocation26_spill] sm:$0xff] }
 0x633   :  { %v2994_v62 = vpop.xlane.xlu1 %883 }
 0x634   :  { %v886_v24 = vperm.slane %v2994_v62, 0  ;;  %v887_v31 = vperm.slane %v2994_v62, 1  ;;  %v888_v60 = vperm.slane %v2994_v62, 2 }
 0x636   :  { %v905_v25 = vadd.f32 %v887_v31, %v3604_v21  ;;  %v903_v14 = vadd.f32 %v886_v24, %v3605_v26  ;;  %v902_v32 = vadd.f32 %v886_v24, %v3606_v42  ;;  %v907_v45 = vadd.f32 %v887_v31, %v3607_v38  ;;  %v3612_v42 = vld [vmem:[#allocation40_spill] sm:$0xff] }
 0x637   :  { %v906_v48 = vadd.f32 %v887_v31, %v3608_v47  ;;  %v904_v52 = vadd.f32 %v886_v24, %v3609_v50  ;;  %v909_v31 = vadd.f32 %v888_v60, %v3612_v42 }
 0x638   :  { %1957 = vtanh.f32 %v905_v25  ;;  %v910_v25 = vadd.f32 %v888_v60, %v3610_v39  ;;  %v3615_v39 = vld [vmem:[#allocation42_spill] sm:$0xff] }
 0x639   :  { %1959 = vtanh.f32 %v903_v14  ;;  %v3611_v14 = vld [vmem:[#allocation34_spill] sm:$0xff] }
 0x63a   :  { %1961 = vtanh.f32 %v902_v32  ;;  %v908_v32 = vadd.f32 %v888_v60, %v3611_v14 }
 0x63b   :  { %1963 = vtanh.f32 %v907_v45  ;;  %v3613_v45 = vld [vmem:[#allocation28_spill] sm:$0xff] }
 0x63c   :  { %1965 = vtanh.f32 %v906_v48 }
 0x63d   :  { %1967 = vtanh.f32 %v904_v52  ;;  %v3614_v52 = vld [vmem:[#allocation36_spill] sm:$0xff] }
 0x63e   :  { %v1958_v49 = vpop.eup %1957  ;;  %1969 = vtanh.f32 %v910_v25 }
 0x63f   :  { %v1960_v58 = vpop.eup %1959  ;;  %984 = vperm.xlu1 %1897, %v1958_v49   ;;  %v889_v49 = vperm.slane %v2994_v62, 3  ;;  %1971 = vtanh.f32 %v908_v32  ;;  %v3617_v32 = vld [vmem:[#allocation38_spill] sm:$0xff] }
 0x640   :  { %v1962_v59 = vpop.eup %1961  ;;  %978 = vperm.xlu0 %1899, %v1960_v58   ;;  %1973 = vtanh.f32 %v909_v31 }
 0x641   :  { %975 = vperm.xlu2 %1898, %v1962_v59   ;;  %v1964_v38 = vpop.eup %1963  ;;  %v913_v48 = vadd.f32 %v889_v49, %v3613_v45  ;;  %v911_v58 = vadd.f32 %v889_v49, %v3614_v52  ;;  %v912_v50 = vadd.f32 %v889_v49, %v3615_v39  ;;  %v3618_v45 = vld [vmem:[#allocation43_spill] sm:$0xff] }
 0x642   :  { %v1966_v47 = vpop.eup %1965 }
 0x643   :  { %v1968_v24 = vpop.eup %1967  ;;  %1975 = vtanh.f32 %v913_v48 }
 0x644   :  { %v1970_v59 = vpop.eup %1969  ;;  %1977 = vtanh.f32 %v911_v58 }
 0x645   :  { %v1972_v14 = vpop.eup %1971  ;;  %1979 = vtanh.f32 %v912_v50  ;;  %v3620_v50 = vld [vmem:[#allocation39_spill] sm:$0xff] }
 0x646   :  { %v1974_v60 = vpop.eup %1973 }
 0x647   :  { %990 = vperm.xlu1 %1897, %v1964_v38   ;;  %v890_v38 = vperm.slane %v2994_v62, 4 }
 0x648   :  { %987 = vperm.xlu0 %1899, %v1966_v47   ;;  %v3616_v47 = vld [vmem:[#allocation30_spill] sm:$0xff] }
 0x649   :  { %981 = vperm.xlu2 %1898, %v1968_v24   ;;  %v916_v25 = vadd.f32 %v890_v38, %v3616_v47  ;;  %v914_v31 = vadd.f32 %v890_v38, %v3617_v32  ;;  %v1976_v24 = vpop.eup %1975  ;;  %v915_v42 = vadd.f32 %v890_v38, %v3618_v45  ;;  %v3621_v47 = vld [vmem:[#allocation44_spill] sm:$0xff] }
 0x64a   :  { %v1978_v52 = vpop.eup %1977 }
 0x64b   :  { %v1980_v49 = vpop.eup %1979  ;;  %1981 = vtanh.f32 %v916_v25 }
 0x64c   :  { %1983 = vtanh.f32 %v914_v31 }
 0x64d   :  { %1985 = vtanh.f32 %v915_v42  ;;  %v3623_v42 = vld [vmem:[#allocation41_spill] sm:$0xff] }
 0x64f   :  { %999 = vperm.xlu1 %1897, %v1970_v59   ;;  %v891_v59 = vperm.slane %v2994_v62, 5 }
 0x650   :  { %993 = vperm.xlu0 %1899, %v1972_v14   ;;  %v3619_v14 = vld [vmem:[#allocation32_spill] sm:$0xff] }
 0x651   :  { %996 = vperm.xlu2 %1898, %v1974_v60   ;;  %v919_v48 = vadd.f32 %v891_v59, %v3619_v14  ;;  %v917_v58 = vadd.f32 %v891_v59, %v3620_v50  ;;  %v1982_v60 = vpop.eup %1981  ;;  %v918_v39 = vadd.f32 %v891_v59, %v3621_v47  ;;  %v3624_v14 = vld [vmem:[#allocation45_spill] sm:$0xff] }
 0x652   :  { %v1984_v32 = vpop.eup %1983 }
 0x653   :  { %v1986_v38 = vpop.eup %1985  ;;  %1987 = vtanh.f32 %v919_v48 }
 0x654   :  { %1989 = vtanh.f32 %v917_v58 }
 0x655   :  { %1991 = vtanh.f32 %v918_v39  ;;  %v3626_v39 = vld [vmem:[#allocation29_spill] sm:$0xff] }
 0x657   :  { %1008 = vperm.xlu1 %1897, %v1976_v24   ;;  %v892_v24 = vperm.slane %v2994_v62, 6 }
 0x658   :  { %1002 = vperm.xlu0 %1899, %v1978_v52   ;;  %v3622_v52 = vld [vmem:[#allocation23_spill] sm:$0xff] }
 0x659   :  { %1005 = vperm.xlu2 %1898, %v1980_v49   ;;  %v922_v25 = vadd.f32 %v892_v24, %v3622_v52  ;;  %v920_v31 = vadd.f32 %v892_v24, %v3623_v42  ;;  %v1988_v49 = vpop.eup %1987  ;;  %v921_v45 = vadd.f32 %v892_v24, %v3624_v14  ;;  %v3627_v52 = vld [vmem:[#allocation35_spill] sm:$0xff] }
 0x65a   :  { %v1990_v50 = vpop.eup %1989 }
 0x65b   :  { %v1992_v59 = vpop.eup %1991  ;;  %1993 = vtanh.f32 %v922_v25 }
 0x65c   :  { %1995 = vtanh.f32 %v920_v31 }
 0x65d   :  { %1997 = vtanh.f32 %v921_v45 }
 0x65f   :  { %1017 = vperm.xlu1 %1897, %v1982_v60   ;;  %v893_v60 = vperm.slane %v2994_v62, 7 }
 0x660   :  { %1011 = vperm.xlu0 %1899, %v1984_v32   ;;  %v3625_v32 = vld [vmem:[#allocation24_spill] sm:$0xff] }
 0x661   :  { %1014 = vperm.xlu2 %1898, %v1986_v38   ;;  %v925_v48 = vadd.f32 %v893_v60, %v3625_v32  ;;  %v923_v58 = vadd.f32 %v893_v60, %v3626_v39  ;;  %v1994_v38 = vpop.eup %1993  ;;  %v924_v47 = vadd.f32 %v893_v60, %v3627_v52 }
 0x662   :  { %v1996_v42 = vpop.eup %1995 }
 0x663   :  { %v1998_v24 = vpop.eup %1997  ;;  %1999 = vtanh.f32 %v925_v48 }
 0x664   :  { %2001 = vtanh.f32 %v923_v58 }
 0x665   :  { %2003 = vtanh.f32 %v924_v47 }
 0x667   :  { %1026 = vperm.xlu1 %1897, %v1988_v49  }
 0x668   :  { %1020 = vperm.xlu0 %1899, %v1990_v50  }
 0x669   :  { %1023 = vperm.xlu2 %1898, %v1992_v59   ;;  %v2000_v62 = vpop.eup %1999 }
 0x66a   :  { %v2002_v50 = vpop.eup %2001 }
 0x66b   :  { %v2004_v25 = vpop.eup %2003 }
 0x66f   :  { %1035 = vperm.xlu1 %1897, %v1994_v38  }
 0x670   :  { %1029 = vperm.xlu0 %1899, %v1996_v42  }
 0x671   :  { %1032 = vperm.xlu2 %1898, %v1998_v24  }
 0x677   :  { %1044 = vperm.xlu1 %1897, %v2000_v62  }
 0x678   :  { %1038 = vperm.xlu0 %1899, %v2002_v50  }
 0x679   :  { %1041 = vperm.xlu2 %1898, %v2004_v25  }
 0x69b   :  { %v976_v45 = vpop.permute.xlu2 %975 }
 0x69c   :  { %v1046_v57 = vperm.slane %v976_v45, %v2755_v44 }
 0x6a3   :  { %v982_v31 = vpop.permute.xlu2 %981 }
 0x6a4   :  { %v1049_v8 = vperm.slane %v982_v31, %v2761_v34 }
 0x6ab   :  { %v997_v32 = vpop.permute.xlu2 %996 }
 0x6ac   :  { %v1057_v53 = vperm.slane %v997_v32, %v2758_v36 }
 0x6b1   :  { %v985_v49 = vpop.permute.xlu1 %984 }
 0x6b2   :  { %v979_v59 = vpop.permute.xlu0 %978  ;;  %v1051_v55 = vperm.slane %v985_v49, %v2755_v44 }
 0x6b3   :  { %v1006_v38 = vpop.permute.xlu2 %1005  ;;  %v1047_v54 = vperm.slane %v979_v59, %v2758_v36 }
 0x6b9   :  { %v991_v60 = vpop.permute.xlu1 %990 }
 0x6ba   :  { %v988_v52 = vpop.permute.xlu0 %987  ;;  %v1054_v33 = vperm.slane %v991_v60, %v2761_v34  ;;  %v1048_v60 = vsel %vm541_vm0, %v1047_v54, %v1046_v57 }
 0x6bb   :  { %v1015_v24 = vpop.permute.xlu2 %1014  ;;  %v1052_v25 = vperm.slane %v988_v52, %v2758_v36  ;;  %v1050_v57 = vsel %vm545_vm1, %v1049_v8, %v1048_v60 }
 0x6bd   :  { %v1053_v45 = vsel %vm541_vm0, %v1052_v25, %v1051_v55 }
 0x6c1   :  { %v1000_v14 = vpop.permute.xlu1 %999 }
 0x6c2   :  { %v994_v42 = vpop.permute.xlu0 %993  ;;  %v1059_v49 = vperm.slane %v1000_v14, %v2761_v34  ;;  %v1055_v14 = vsel %vm545_vm1, %v1054_v33, %v1053_v45 }
 0x6c3   :  { %v1024_v26 = vpop.permute.xlu2 %1023  ;;  %v1056_v6 = vperm.slane %v994_v42, %v2755_v44  ;;  %v1062_v42 = vperm.slane %v1006_v38, %v2758_v36  ;;  %v1086_v33 = vsel %vm582_vm2, %v1055_v14, %v1050_v57 }
 0x6c5   :  { %v1058_v9 = vsel %vm541_vm0, %v1057_v53, %v1056_v6 }
 0x6c6   :  { %v1060_v6 = vsel %vm545_vm1, %v1059_v49, %v1058_v9 }
 0x6c9   :  { %v1009_v48 = vpop.permute.xlu1 %1008 }
 0x6ca   :  { %v1003_v58 = vpop.permute.xlu0 %1002  ;;  %v1064_v31 = vperm.slane %v1009_v48, %v2761_v34 }
 0x6cb   :  { %v1033_v50 = vpop.permute.xlu2 %1032  ;;  %v1061_v35 = vperm.slane %v1003_v58, %v2755_v44  ;;  %v1067_v58 = vperm.slane %v1015_v24, %v2758_v36 }
 0x6cd   :  { %v1063_v38 = vsel %vm541_vm0, %v1062_v42, %v1061_v35 }
 0x6ce   :  { %v1065_v35 = vsel %vm545_vm1, %v1064_v31, %v1063_v38 }
 0x6d1   :  { %v1018_v47 = vpop.permute.xlu1 %1017 }
 0x6d2   :  { %v1012_v39 = vpop.permute.xlu0 %1011  ;;  %v1069_v55 = vperm.slane %v1018_v47, %v2761_v34 }
 0x6d3   :  { %v1066_v2 = vperm.slane %v1012_v39, %v2755_v44  ;;  %v1072_v39 = vperm.slane %v1024_v26, %v2758_v36  ;;  %v1042_v26 = vpop.permute.xlu2 %1041 }
 0x6d4   :  { %v1082_v8 = vperm.slane %v1042_v26, %v2758_v36 }
 0x6d5   :  { %v1068_v24 = vsel %vm541_vm0, %v1067_v58, %v1066_v2 }
 0x6d9   :  { %v1027_v62 = vpop.permute.xlu1 %1026 }
 0x6da   :  { %v1021_v21 = vpop.permute.xlu0 %1020  ;;  %v1074_v53 = vperm.slane %v1027_v62, %v2761_v34  ;;  %v1087_v62 = vsel %vm584_vm3, %v1060_v6, %v1086_v33  ;;  %v3629_v33 = vld [vmem:[#allocation19_spill] sm:$0xff] }
 0x6db   :  { %v1071_v59 = vperm.slane %v1021_v21, %v2755_v44  ;;  %v1077_v21 = vperm.slane %v1033_v50, %v2758_v36  ;;  %v1070_v50 = vsel %vm545_vm1, %v1069_v55, %v1068_v24 }
 0x6dd   :  { %v1073_v48 = vsel %vm541_vm0, %v1072_v39, %v1071_v59 }
 0x6de   :  { %v1075_v9 = vsel %vm545_vm1, %v1074_v53, %v1073_v48 }
 0x6e1   :  { %v1036_v51 = vpop.permute.xlu1 %1035 }
 0x6e2   :  { %v1030_v52 = vpop.permute.xlu0 %1029  ;;  %v1079_v54 = vperm.slane %v1036_v51, %v2761_v34  ;;  %v1088_v51 = vsel %vm586_vm4, %v1065_v35, %v1087_v62 }
 0x6e3   :  { %v1076_v32 = vperm.slane %v1030_v52, %v2755_v44  ;;  %v1089_v49 = vsel %vm588_vm5, %v1070_v50, %v1088_v51  ;;  %v3630_v50 = vld [vmem:[#allocation18_spill] sm:$0xff]  ;;  %v2067_v51 = vld [vmem:[%s3464_s5 + $0x68] sm:$0xff] }
 0x6e4   :  { %v1090_v58 = vsel %vm590_vm6, %v1075_v9, %v1089_v49  ;;  %v2061_v9 = vld [vmem:[%s3461_s10 + $0x78] sm:$0xff]  ;;  %v2074_v49 = vld [vmem:[%s3461_s10 + $0x40] sm:$0xff] }
 0x6e5   :  { %v1078_v47 = vsel %vm541_vm0, %v1077_v21, %v1076_v32 }
 0x6e6   :  { %v1080_v45 = vsel %vm545_vm1, %v1079_v54, %v1078_v47  ;;  %v3628_v47 = vld [vmem:[#allocation7_spill] sm:$0xff] }
 0x6e7   :  { %v1091_v32 = vsel %vm592_vm7, %v1080_v45, %v1090_v58  ;;  %v2072_v45 = vld [vmem:[%s3461_s10 + $0x48] sm:$0xff]  ;;  %v2078_v58 = vld [vmem:[%s3461_s10 + $0x30] sm:$0xff] }
 0x6e9   :  { %v1045_v2 = vpop.permute.xlu1 %1044 }
 0x6ea   :  { %v1084_v25 = vperm.slane %v1045_v2, %v2761_v34  ;;  %v1039_v52 = vpop.permute.xlu0 %1038 }
 0x6eb   :  { %v1081_v42 = vperm.slane %v1039_v52, %v2755_v44 }
 0x6ed   :  { %v1083_v59 = vsel %vm541_vm0, %v1082_v8, %v1081_v42  ;;  %v2069_v42 = vld [vmem:[%s3464_s5 + $0x60] sm:$0xff] }
 0x6ee   :  { %v1085_v31 = vsel %vm545_vm1, %v1084_v25, %v1083_v59  ;;  %v2065_v25 = vld [vmem:[%s3464_s5 + $0x70] sm:$0xff]  ;;  %v2076_v59 = vld [vmem:[%s3461_s10 + $0x38] sm:$0xff] }
 0x6ef   :  { %v1092_v60 = vsel %vm594_vm8, %v1085_v31, %v1091_v32  ;;  %v2080_v31 = vld [vmem:[%s3461_s10 + $0x28] sm:$0xff]  ;;  %v2082_v32 = vld [vmem:[%s3461_s10 + $0x20] sm:$0xff] }
 0x6f0   :  { %v1094_v39 = vsel %vm2810_vm9, %v1092_v60, -1e+30  ;;  %v2084_v60 = vld [vmem:[%s3461_s10 + $0x18] sm:$0xff] }
 0x6f1   :  { %v1095_v38 = vsel %vm598_vm10, %v1094_v39, -inf }
 0x6f2   :  { %1096 = vmax.xlane.f32.xlu0 %v1095_v38  ;;  %v2088_v38 = vld [vmem:[%s3461_s10 + $0x8] sm:$0xff] }
 0x765   :  { %v1097_v55 = vpop.xlane.xlu0 %1096 }
 0x766   :  { %v1098_v14 = vsub.f32 %v1094_v39, %v1097_v55  ;;  %v2086_v39 = vld [vmem:[%s3461_s10 + $0x10] sm:$0xff]  ;;  %v2090_v55 = vld [vmem:[%s3461_s10] sm:$0xff] }
 0x768   :  { %v1099_v21 = vmul.f32 1.442695, %v1098_v14  ;;  %v2092_v14 = vld [vmem:[%s3464_s5] sm:$0xff] }
 0x76a   :  { %2005 = vpow2.f32 %v1099_v21 }
 0x770   :  { %v2006_v24 = vpop.eup %2005 }
 0x771   :  { %v1101_v53 = vsel %vm2810_vm9, %v2006_v24, 0.0 }
 0x772   :  { %v1102_v6 = vsel %vm598_vm10, %v1101_v53, 0.0 }
 0x773   :  { %1103 = vadd.xlane.f32.xlu2 %v1102_v6 }
 0x7e6   :  { %v1104_v48 = vpop.xlane.xlu2 %1103 }
 0x7e7   :  { %2007 = vrcp.f32 %v1104_v48 }
 0x7ed   :  { %v2008_v54 = vpop.eup %2007 }
 0x7ee   :  { %v1106_v57 = vmul.f32 %v2008_v54, %v1101_v53 }
 0x7f0   :  { %1864 = vmatmul.msk.f32.vlgmr.msra.gmra.mxu1 %vm598_vm10, %v1106_v57  ;;  %v1108_v35 = vrot.slane %v1106_v57, 1  ;;  %v1109_v26 = vrot.slane %v1106_v57, 2  ;;  %v1110_v2 = vrot.slane %v1106_v57, 3  ;;  %v1111_v62 = vrot.slane %v1106_v57, 4 }
 0x7f1   :  { %1262 = vmatpush.msra.mxu1 %v3628_v47  ;;  %v1113_v52 = vrot.slane %v1106_v57, 6  ;;  %v1114_v8 = vrot.slane %v1106_v57, 7 }
 0x7f2   :  { %1865 = vmatmul.msk.f32.vlgmr.msrb.gmra.mxu2 %vm598_vm10, %v1108_v35  ;;  %1866 = vmatmul.msk.f32.vlgmr.msrb.gmra.mxu3 %vm598_vm10, %v1109_v26 }
 0x7f3   :  { %1263 = vmatpush.msra.mxu1 %v3629_v33  ;;  %1284 = vmatpush.msrb.mxu2 %v2549_v56 }
 0x7f4   :  { %1314 = vmatpush.msrb.mxu3 %v2824_v5  ;;  %v1112_v5 = vrot.slane %v1106_v57, 5 }
 0x7f5   :  { %1264 = vmatpush.msra.mxu1 %v3630_v50  ;;  %1285 = vmatpush.msrb.mxu2 %v2542_v43 }
 0x7f6   :  { %1315 = vmatpush.msrb.mxu3 %v2829_v7  ;;  %v2062_v7 = vld [vmem:[%s3461_s10 + $0x70] sm:$0xff] }
 0x7f7   :  { %1286 = vmatpush.msrb.mxu2 %v2527_v28 }
 0x7f8   :  { %1316 = vmatpush.msrb.mxu3 %v2835_v3  ;;  %1867 = vmatmul.msk.f32.vlgmr.msrb.gmra.mxu1 %vm598_vm10, %v1110_v2  ;;  %v2063_v3 = vld [vmem:[%s3464_s5 + $0x78] sm:$0xff] }
 0x7f9   :  { %1335 = vmatpush.msrb.mxu1 %v2061_v9 }
 0x7fa   :  { %1317 = vmatpush.msrb.mxu3 %v2841_v19  ;;  %1868 = vmatmul.msk.f32.vlgmr.msra.gmra.mxu2 %vm598_vm10, %v1111_v62  ;;  %v2064_v19 = vld [vmem:[%s3461_s10 + $0x68] sm:$0xff] }
 0x7fb   :  { %1869 = vmatmul.msk.f32.vlgmr.msra.gmra.mxu3 %vm598_vm10, %v1112_v5  ;;  %1336 = vmatpush.msrb.mxu1 %v2062_v7 }
 0x7fc   :  { %1318 = vmatpush.msrb.mxu3 %v2847_v30  ;;  %1355 = vmatpush.msra.mxu2 %v2063_v3  ;;  %v2066_v30 = vld [vmem:[%s3461_s10 + $0x60] sm:$0xff] }
 0x7fd   :  { %1337 = vmatpush.msrb.mxu1 %v2064_v19  ;;  %v3631_v19 = vld [vmem:[#allocation11_spill] sm:$0xff] }
 0x7fe   :  { %1319 = vmatpush.msrb.mxu3 %v2853_v1  ;;  %1356 = vmatpush.msra.mxu2 %v2065_v25  ;;  %v2068_v1 = vld [vmem:[%s3461_s10 + $0x58] sm:$0xff]  ;;  %v3632_v25 = vld [vmem:[#allocation10_spill] sm:$0xff] }
 0x7ff   :  { %1338 = vmatpush.msrb.mxu1 %v2066_v30 }
 0x800   :  { %1320 = vmatpush.msrb.mxu3 %v2859_v63  ;;  %1357 = vmatpush.msra.mxu2 %v2067_v51  ;;  %v2070_v63 = vld [vmem:[%s3461_s10 + $0x50] sm:$0xff] }
 0x801   :  { %1870 = vmatmul.msk.f32.vlgmr.msra.gmra.mxu1 %vm598_vm10, %v1113_v52  ;;  %v3633_v52 = vld [vmem:[#allocation4_spill] sm:$0xff] }
 0x802   :  { %1321 = vmatpush.msrb.mxu3 %v2865_v4  ;;  %1339 = vmatpush.msrb.mxu1 %v2068_v1  ;;  %v2071_v4 = vld [vmem:[%s3464_s5 + $0x58] sm:$0xff]  ;;  %v3634_v1 = vld [vmem:[#allocation5_spill] sm:$0xff] }
 0x803   :  { %1358 = vmatpush.msra.mxu2 %v2069_v42  ;;  %v3635_v42 = vld [vmem:[#allocation14_spill] sm:$0xff] }
 0x804   :  { %1871 = vmatmul.msk.f32.vlgmr.msrb.gmra.mxu2 %vm598_vm10, %v1114_v8  ;;  %1322 = vmatpush.msrb.mxu3 %v2871_v10  ;;  %v2073_v10 = vld [vmem:[%s3464_s5 + $0x50] sm:$0xff] }
 0x805   :  { %1340 = vmatpush.msrb.mxu1 %v2070_v63  ;;  %1359 = vmatpush.msra.mxu2 %v2071_v4  ;;  %v3636_v63 = vld [vmem:[#allocation13_spill] sm:$0xff]  ;;  %v3637_v4 = vld [vmem:[#allocation12_spill] sm:$0xff] }
 0x806   :  { %1323 = vmatpush.msrb.mxu3 %v2877_v20  ;;  %v2075_v20 = vld [vmem:[%s3464_s5 + $0x48] sm:$0xff] }
 0x807   :  { %1341 = vmatpush.msrb.mxu1 %v2072_v45  ;;  %1360 = vmatpush.msra.mxu2 %v2073_v10 }
 0x808   :  { %1324 = vmatpush.msrb.mxu3 %v2887_v15  ;;  %v2077_v15 = vld [vmem:[%s3464_s5 + $0x40] sm:$0xff] }
 0x809   :  { %1342 = vmatpush.msrb.mxu1 %v2074_v49  ;;  %1361 = vmatpush.msra.mxu2 %v2075_v20  ;;  %v3638_v49 = vld [vmem:[#allocation17_spill] sm:$0xff]  ;;  %v3639_v20 = vld [vmem:[#allocation16_spill] sm:$0xff] }
 0x80a   :  { %1325 = vmatpush.msrb.mxu3 %v2892_v18  ;;  %v2079_v18 = vld [vmem:[%s3464_s5 + $0x38] sm:$0xff] }
 0x80b   :  { %1343 = vmatpush.msrb.mxu1 %v2076_v59  ;;  %1362 = vmatpush.msra.mxu2 %v2077_v15  ;;  %v3640_v59 = vld [vmem:[#allocation15_spill] sm:$0xff] }
 0x80c   :  { %1326 = vmatpush.msrb.mxu3 %v2898_v23  ;;  %v2081_v23 = vld [vmem:[%s3464_s5 + $0x30] sm:$0xff] }
 0x80d   :  { %1344 = vmatpush.msrb.mxu1 %v2078_v58  ;;  %1363 = vmatpush.msra.mxu2 %v2079_v18  ;;  %v2094_v58 = vld [vmem:[%s3466_s6] ss:$0 sm:$0xff] }
 0x80e   :  { %1327 = vmatpush.msrb.mxu3 %v2904_v37  ;;  %v2083_v37 = vld [vmem:[%s3464_s5 + $0x28] sm:$0xff] }
 0x80f   :  { %1345 = vmatpush.msrb.mxu1 %v2080_v31  ;;  %1364 = vmatpush.msra.mxu2 %v2081_v23  ;;  %v3641_v31 = vld [vmem:[#allocation21_spill] sm:$0xff] }
 0x810   :  { %1328 = vmatpush.msrb.mxu3 %v2910_v12  ;;  %v2085_v12 = vld [vmem:[%s3464_s5 + $0x20] sm:$0xff] }
 0x811   :  { %1346 = vmatpush.msrb.mxu1 %v2082_v32  ;;  %1365 = vmatpush.msra.mxu2 %v2083_v37 }
 0x812   :  { %1329 = vmatpush.msrb.mxu3 %v2916_v0  ;;  %v2087_v0 = vld [vmem:[%s3464_s5 + $0x18] sm:$0xff] }
 0x813   :  { %1347 = vmatpush.msrb.mxu1 %v2084_v60  ;;  %1366 = vmatpush.msra.mxu2 %v2085_v12  ;;  %v3642_v12 = vld [vmem:[#allocation31_spill] sm:$0xff] }
 0x814   :  { %1623 = vmatpush.msra.mxu3 %v2533_v40  ;;  %v2089_v40 = vld [vmem:[%s3464_s5 + $0x10] sm:$0xff] }
 0x815   :  { %1348 = vmatpush.msrb.mxu1 %v2086_v39  ;;  %1367 = vmatpush.msra.mxu2 %v2087_v0  ;;  %v3643_v0 = vld [vmem:[#allocation27_spill] sm:$0xff] }
 0x816   :  { %1624 = vmatpush.msra.mxu3 %v2520_v17  ;;  %v2091_v17 = vld [vmem:[%s3464_s5 + $0x8] sm:$0xff] }
 0x817   :  { %1349 = vmatpush.msrb.mxu1 %v2088_v38  ;;  %1368 = vmatpush.msra.mxu2 %v2089_v40  ;;  %v3644_v40 = vld [vmem:[#allocation22_spill] sm:$0xff] }
 0x818   :  { %1625 = vmatpush.msra.mxu3 %v2508_v11 }
 0x819   :  { %1350 = vmatpush.msrb.mxu1 %v2090_v55  ;;  %1369 = vmatpush.msra.mxu2 %v2091_v17 }
 0x81b   :  { %1645 = vmatpush.msra.mxu1 %v2575_v16  ;;  %1370 = vmatpush.msra.mxu2 %v2092_v14  ;;  %v3645_v14 = vld [vmem:[#allocation34_spill] sm:$0xff] }
 0x81d   :  { %1646 = vmatpush.msra.mxu1 %v2569_v13  ;;  %1667 = vmatpush.msrb.mxu2 %v2593_v46 }
 0x81f   :  { %1647 = vmatpush.msra.mxu1 %v2552_v61  ;;  %1668 = vmatpush.msrb.mxu2 %v2588_v41 }
 0x821   :  { %1669 = vmatpush.msrb.mxu2 %v2583_v29 }
 0x86d   :  { %v1134_v11 = vpop.f32.mrf.mxu1 }
 0x875   :  { %v1156_v21 = vpop.f32.mrf.mxu2  ;;  %v1178_v24 = vpop.f32.mrf.mxu3 }
 0x876   :  { %v1299_v53 = vrot.slane %v1156_v21, 7  ;;  %v1200_v16 = vpop.f32.mrf.mxu1  ;;  %v1301_v6 = vrot.slane %v1178_v24, 6  ;;  %v3646_v21 = vld [vmem:[#allocation33_spill] sm:$0xff] }
 0x877   :  { %v1303_v46 = vrot.slane %v1200_v16, 5  ;;  %v3647_v16 = vld [vmem:[#allocation37_spill] sm:$0xff] }
 0x878   :  { %v1300_v48 = vsel %vm582_vm2, %v1299_v53, %v1134_v11 }
 0x879   :  { %v1302_v57 = vsel %vm584_vm3, %v1301_v6, %v1300_v48 }
 0x87a   :  { %v1304_v61 = vsel %vm586_vm4, %v1303_v46, %v1302_v57  ;;  %v3649_v46 = vld [vmem:[#allocation40_spill] sm:$0xff] }
 0x87d   :  { %v1222_v54 = vpop.f32.mrf.mxu2 }
 0x87e   :  { %v1305_v13 = vrot.slane %v1222_v54, 4  ;;  %v1244_v35 = vpop.f32.mrf.mxu3  ;;  %v1266_v29 = vpop.f32.mrf.mxu1 }
 0x87f   :  { %v1307_v26 = vrot.slane %v1244_v35, 3  ;;  %v1309_v62 = vrot.slane %v1266_v29, 2 }
 0x880   :  { %v1306_v41 = vsel %vm588_vm5, %v1305_v13, %v1304_v61  ;;  %v3648_v13 = vld [vmem:[#allocation36_spill] sm:$0xff] }
 0x881   :  { %v1308_v2 = vsel %vm590_vm6, %v1307_v26, %v1306_v41  ;;  %v3650_v41 = vld [vmem:[#allocation25_spill] sm:$0xff] }
 0x882   :  { %v1310_v7 = vsel %vm592_vm7, %v1309_v62, %v1308_v2 }
 0x887   :  { %v1288_v9 = vpop.f32.mrf.mxu2 }
 0x888   :  { %v1311_v5 = vrot.slane %v1288_v9, 1 }
 0x88a   :  { %v1312_v3 = vsel %vm594_vm8, %v1311_v5, %v1310_v7  ;;  %v3651_v5 = vld [vmem:[#allocation38_spill] sm:$0xff] }
 0x88b   :  { %1330 = vmatmul.f32.vlgmr.msrb.gmra.mxu3 %v1312_v3  ;;  %v3652_v3 = vld [vmem:[#allocation42_spill] sm:$0xff] }
 0x88c   :  { %1689 = vmatpush.msrb.mxu3 %v2608_v22  ;;  %v2093_v22 = vld [vmem:[%s3463_s11] ss:$0 sm:$0xff] }
 0x88e   :  { %1690 = vmatpush.msrb.mxu3 %v3631_v19 }
 0x890   :  { %1691 = vmatpush.msrb.mxu3 %v3632_v25 }
 0x90e   :  { %v1331_v30 = vpop.f32.mrf.mxu3 }
 0x90f   :  { %v1332_v51 = vadd.f32 %v3633_v52, %v1331_v30  ;;  %v3653_v30 = vld [vmem:[#allocation26_spill] sm:$0xff] }
 0x911   :  { %v1334_v8 = vadd.f32 %v1332_v51, %v3634_v1 }
 0x913   :  { %1351 = vmatmul.f32.vlgmr.msrb.gmra.mxu1 %v1334_v8 }
 0x914   :  { %1711 = vmatpush.msrb.mxu1 %v3635_v42  ;;  %v3654_v42 = vld [vmem:[#allocation39_spill] sm:$0xff] }
 0x916   :  { %1712 = vmatpush.msrb.mxu1 %v3636_v63 }
 0x918   :  { %1713 = vmatpush.msrb.mxu1 %v3637_v4  ;;  %v3655_v4 = vld [vmem:[#allocation43_spill] sm:$0xff] }
 0x990   :  { %v1352_v45 = vpop.f32.mrf.mxu1 }
 0x991   :  { %v3234_v10 = vadd.f32 %v2093_v22, %v1352_v45 }
 0x993   :  { %1371 = vmatmul.f32.vlgmr.msra.gmra.mxu2 %v3234_v10 }
 0x994   :  { %1733 = vmatpush.msra.mxu2 %v3638_v49  ;;  %v3656_v49 = vld [vmem:[#allocation28_spill] sm:$0xff] }
 0x996   :  { %1734 = vmatpush.msra.mxu2 %v3639_v20 }
 0x998   :  { %1735 = vmatpush.msra.mxu2 %v3640_v59 }
 0xa16   :  { %v1372_v15 = vpop.f32.mrf.mxu2 }
 0xa17   :  { %v1373_v18 = vadd.f32 %v2094_v58, %v1372_v15 }
 0xa19   :  { %v1375_v23 = vmul.f32 %v1373_v18, %v3641_v31  ;;  %v3657_v18 = vld [vmem:[#allocation41_spill] sm:$0xff] }
 0xa1b   :  { %1376 = vadd.xlane.f32.xlu1 %v1375_v23  ;;  %v3658_v23 = vld [vmem:[#allocation44_spill] sm:$0xff] }
 0xa8e   :  { %v3244_v32 = vpop.xlane.xlu1 %1376 }
 0xa8f   :  { %v1379_v37 = vperm.slane %v3244_v32, 0  ;;  %v1380_v60 = vperm.slane %v3244_v32, 1  ;;  %v1381_v17 = vperm.slane %v3244_v32, 2  ;;  %v1382_v57 = vperm.slane %v3244_v32, 3 }
 0xa90   :  { %v1383_v9 = vperm.slane %v3244_v32, 4  ;;  %v1384_v8 = vperm.slane %v3244_v32, 5  ;;  %v1385_v58 = vperm.slane %v3244_v32, 6 }
 0xa91   :  { %v1398_v39 = vadd.f32 %v1380_v60, %v3642_v12  ;;  %v1396_v38 = vadd.f32 %v1379_v37, %v3643_v0  ;;  %v1395_v55 = vadd.f32 %v1379_v37, %v3644_v40  ;;  %v1401_v11 = vadd.f32 %v1381_v17, %v3645_v14  ;;  %v3659_v12 = vld [vmem:[#allocation30_spill] sm:$0xff]  ;;  %v3661_v14 = vld [vmem:[#allocation45_spill] sm:$0xff] }
 0xa92   :  { %v1397_v24 = vadd.f32 %v1379_v37, %v3646_v21  ;;  %v1399_v6 = vadd.f32 %v1380_v60, %v3647_v16  ;;  %v1404_v35 = vadd.f32 %v1382_v57, %v3648_v13  ;;  %v1402_v61 = vadd.f32 %v1381_v17, %v3649_v46 }
 0xa93   :  { %2009 = vtanh.f32 %v1398_v39  ;;  %v1400_v29 = vadd.f32 %v1380_v60, %v3650_v41  ;;  %v1407_v7 = vadd.f32 %v1383_v9, %v3651_v5  ;;  %v1405_v19 = vadd.f32 %v1382_v57, %v3652_v3 }
 0xa94   :  { %2011 = vtanh.f32 %v1396_v38  ;;  %v1403_v52 = vadd.f32 %v1381_v17, %v3653_v30  ;;  %v1410_v63 = vadd.f32 %v1384_v8, %v3654_v42  ;;  %v1408_v45 = vadd.f32 %v1383_v9, %v3655_v4 }
 0xa95   :  { %2013 = vtanh.f32 %v1395_v55  ;;  %v1406_v20 = vadd.f32 %v1382_v57, %v3656_v49  ;;  %v1413_v31 = vadd.f32 %v1385_v58, %v3657_v18  ;;  %v1411_v37 = vadd.f32 %v1384_v8, %v3658_v23  ;;  %v3660_v55 = vld [vmem:[#allocation29_spill] sm:$0xff]  ;;  %v3664_v57 = vld [vmem:[#allocation23_spill] sm:$0xff] }
 0xa96   :  { %2015 = vtanh.f32 %v1401_v11  ;;  %v1409_v39 = vadd.f32 %v1383_v9, %v3659_v12  ;;  %v1386_v40 = vperm.slane %v3244_v32, 7  ;;  %v1414_v11 = vadd.f32 %v1385_v58, %v3661_v14  ;;  %v3663_v32 = vld [vmem:[#allocation35_spill] sm:$0xff] }
 0xa97   :  { %2017 = vtanh.f32 %v1397_v24  ;;  %v3662_v24 = vld [vmem:[#allocation32_spill] sm:$0xff]  ;;  %v1415_v13 = vadd.f32 %v1385_v58, %v3664_v57 }
 0xa98   :  { %2019 = vtanh.f32 %v1399_v6  ;;  %v1416_v17 = vadd.f32 %v1386_v40, %v3660_v55 }
 0xa99   :  { %v2010_v53 = vpop.eup %2009  ;;  %2021 = vtanh.f32 %v1404_v35 }
 0xa9a   :  { %v2012_v48 = vpop.eup %2011  ;;  %1477 = vperm.xlu1 %1897, %v2010_v53   ;;  %2023 = vtanh.f32 %v1402_v61  ;;  %v1412_v53 = vadd.f32 %v1384_v8, %v3662_v24  ;;  %v3665_v61 = vld [vmem:[#allocation24_spill] sm:$0xff] }
 0xa9b   :  { %v2014_v54 = vpop.eup %2013  ;;  %1471 = vperm.xlu2 %1898, %v2012_v48   ;;  %2025 = vtanh.f32 %v1400_v29  ;;  %v1417_v48 = vadd.f32 %v1386_v40, %v3663_v32 }
 0xa9c   :  { %1468 = vperm.xlu0 %1899, %v2014_v54   ;;  %v2016_v26 = vpop.eup %2015  ;;  %2027 = vtanh.f32 %v1407_v7 }
 0xa9d   :  { %v2018_v2 = vpop.eup %2017  ;;  %2029 = vtanh.f32 %v1405_v19 }
 0xa9e   :  { %v2020_v62 = vpop.eup %2019  ;;  %2031 = vtanh.f32 %v1403_v52 }
 0xa9f   :  { %v2022_v25 = vpop.eup %2021  ;;  %2033 = vtanh.f32 %v1410_v63 }
 0xaa0   :  { %v2024_v51 = vpop.eup %2023  ;;  %2035 = vtanh.f32 %v1408_v45 }
 0xaa1   :  { %v2026_v1 = vpop.eup %2025  ;;  %2037 = vtanh.f32 %v1406_v20 }
 0xaa2   :  { %1486 = vperm.xlu1 %1897, %v2016_v26   ;;  %v2028_v22 = vpop.eup %2027  ;;  %2039 = vtanh.f32 %v1413_v31  ;;  %v1418_v26 = vadd.f32 %v1386_v40, %v3665_v61 }
 0xaa3   :  { %1474 = vperm.xlu2 %1898, %v2018_v2   ;;  %v2030_v59 = vpop.eup %2029  ;;  %2041 = vtanh.f32 %v1411_v37 }
 0xaa4   :  { %1480 = vperm.xlu0 %1899, %v2020_v62   ;;  %v2032_v15 = vpop.eup %2031  ;;  %2043 = vtanh.f32 %v1409_v39 }
 0xaa5   :  { %v2034_v60 = vpop.eup %2033  ;;  %2045 = vtanh.f32 %v1416_v17 }
 0xaa6   :  { %v2036_v0 = vpop.eup %2035  ;;  %2047 = vtanh.f32 %v1414_v11 }
 0xaa7   :  { %v2038_v38 = vpop.eup %2037  ;;  %2049 = vtanh.f32 %v1412_v53 }
 0xaa8   :  { %v2040_v21 = vpop.eup %2039  ;;  %2051 = vtanh.f32 %v1417_v48 }
 0xaa9   :  { %v2042_v16 = vpop.eup %2041  ;;  %2053 = vtanh.f32 %v1415_v13 }
 0xaaa   :  { %1495 = vperm.xlu1 %1897, %v2022_v25   ;;  %v2044_v6 = vpop.eup %2043  ;;  %2055 = vtanh.f32 %v1418_v26 }
 0xaab   :  { %1489 = vperm.xlu2 %1898, %v2024_v51   ;;  %v2046_v54 = vpop.eup %2045 }
 0xaac   :  { %1483 = vperm.xlu0 %1899, %v2026_v1   ;;  %v2048_v35 = vpop.eup %2047 }
 0xaad   :  { %v2050_v46 = vpop.eup %2049 }
 0xaae   :  { %v2052_v41 = vpop.eup %2051 }
 0xaaf   :  { %v2054_v29 = vpop.eup %2053 }
 0xab0   :  { %v2056_v2 = vpop.eup %2055 }
 0xab2   :  { %1504 = vperm.xlu1 %1897, %v2028_v22  }
 0xab3   :  { %1498 = vperm.xlu2 %1898, %v2030_v59  }
 0xab4   :  { %1492 = vperm.xlu0 %1899, %v2032_v15  }
 0xaba   :  { %1513 = vperm.xlu1 %1897, %v2034_v60  }
 0xabb   :  { %1507 = vperm.xlu2 %1898, %v2036_v0  }
 0xabc   :  { %1501 = vperm.xlu0 %1899, %v2038_v38  }
 0xac2   :  { %1522 = vperm.xlu1 %1897, %v2040_v21  }
 0xac3   :  { %1516 = vperm.xlu2 %1898, %v2042_v16  }
 0xac4   :  { %1510 = vperm.xlu0 %1899, %v2044_v6  }
 0xaca   :  { %1531 = vperm.xlu1 %1897, %v2046_v54  }
 0xacb   :  { %1525 = vperm.xlu2 %1898, %v2048_v35  }
 0xacc   :  { %1519 = vperm.xlu0 %1899, %v2050_v46  }
 0xad3   :  { %1534 = vperm.xlu2 %1898, %v2052_v41  }
 0xad4   :  { %1528 = vperm.xlu0 %1899, %v2054_v29  }
 0xadc   :  { %1537 = vperm.xlu0 %1899, %v2056_v2  }
 0xaf5   :  { %v1472_v62 = vpop.permute.xlu2 %1471 }
 0xaf6   :  { %v1540_v18 = vperm.slane %v1472_v62, %v2758_v36 }
 0xafd   :  { %v1475_v7 = vpop.permute.xlu2 %1474 }
 0xafe   :  { %v1542_v31 = vperm.slane %v1475_v7, %v2761_v34 }
 0xb05   :  { %v1490_v25 = vpop.permute.xlu2 %1489 }
 0xb06   :  { %v1550_v60 = vperm.slane %v1490_v25, %v2758_v36 }
 0xb0c   :  { %v1478_v9 = vpop.permute.xlu1 %1477 }
 0xb0d   :  { %v1499_v51 = vpop.permute.xlu2 %1498  ;;  %v1544_v12 = vperm.slane %v1478_v9, %v2755_v44 }
 0xb0e   :  { %v1469_v5 = vpop.permute.xlu0 %1468  ;;  %v1555_v40 = vperm.slane %v1499_v51, %v2758_v36 }
 0xb0f   :  { %v1539_v15 = vperm.slane %v1469_v5, %v2755_v44 }
 0xb11   :  { %v1541_v55 = vsel %vm541_vm0, %v1540_v18, %v1539_v15 }
 0xb12   :  { %v1543_v61 = vsel %vm545_vm1, %v1542_v31, %v1541_v55  ;;  %v2101_v55 = vld [vmem:[%s3468_s8 + $0x48] sm:$0xff] }
 0xb14   :  { %v1487_v19 = vpop.permute.xlu1 %1486 }
 0xb15   :  { %v1508_v42 = vpop.permute.xlu2 %1507  ;;  %v1549_v23 = vperm.slane %v1487_v19, %v2755_v44 }
 0xb16   :  { %v1481_v3 = vpop.permute.xlu0 %1480  ;;  %v1560_v11 = vperm.slane %v1508_v42, %v2758_v36 }
 0xb17   :  { %v1545_v58 = vperm.slane %v1481_v3, %v2758_v36  ;;  %v1551_v16 = vsel %vm541_vm0, %v1550_v60, %v1549_v23 }
 0xb19   :  { %v1546_v21 = vsel %vm541_vm0, %v1545_v58, %v1544_v12 }
 0xb1c   :  { %v1496_v52 = vpop.permute.xlu1 %1495 }
 0xb1d   :  { %v1517_v22 = vpop.permute.xlu2 %1516  ;;  %v1554_v39 = vperm.slane %v1496_v52, %v2755_v44 }
 0xb1e   :  { %v1484_v30 = vpop.permute.xlu0 %1483  ;;  %v1565_v13 = vperm.slane %v1517_v22, %v2758_v36 }
 0xb1f   :  { %v1547_v37 = vperm.slane %v1484_v30, %v2761_v34  ;;  %v1556_v57 = vsel %vm541_vm0, %v1555_v40, %v1554_v39 }
 0xb21   :  { %v1548_v6 = vsel %vm545_vm1, %v1547_v37, %v1546_v21  ;;  %v2105_v21 = vld [vmem:[%s3468_s8 + $0x28] sm:$0xff] }
 0xb22   :  { %v1579_v62 = vsel %vm582_vm2, %v1548_v6, %v1543_v61  ;;  %v2109_v6 = vld [vmem:[%s3468_s8 + $0x8] sm:$0xff]  ;;  %v149_v61 = vld [vmem:[%s3470_s12 + $0x50] sm:$0xff] }
 0xb24   :  { %v1505_v8 = vpop.permute.xlu1 %1504 }
 0xb25   :  { %v1526_v59 = vpop.permute.xlu2 %1525  ;;  %v1559_v17 = vperm.slane %v1505_v8, %v2755_v44 }
 0xb26   :  { %v1493_v1 = vpop.permute.xlu0 %1492  ;;  %v1570_v41 = vperm.slane %v1526_v59, %v2758_v36 }
 0xb27   :  { %v1552_v0 = vperm.slane %v1493_v1, %v2761_v34  ;;  %v1561_v26 = vsel %vm541_vm0, %v1560_v11, %v1559_v17  ;;  %v2102_v17 = vld [vmem:[%s3468_s8 + $0x40] sm:$0xff]  ;;  %v2104_v11 = vld [vmem:[%s3468_s8 + $0x30] sm:$0xff] }
 0xb29   :  { %v1553_v35 = vsel %vm545_vm1, %v1552_v0, %v1551_v16  ;;  %v2097_v0 = vld [vmem:[%s3468_s8 + $0x68] sm:$0xff]  ;;  %v2108_v16 = vld [vmem:[%s3468_s8 + $0x10] sm:$0xff] }
 0xb2a   :  { %v1580_v3 = vsel %vm584_vm3, %v1553_v35, %v1579_v62  ;;  %v150_v35 = vld [vmem:[%s3470_s12 + $0x58] sm:$0xff] }
 0xb2b   :  { %v146_v62 = vld [vmem:[%s3470_s12 + $0x38] sm:$0xff] }
 0xb2c   :  { %v1514_v4 = vpop.permute.xlu1 %1513 }
 0xb2d   :  { %v1564_v24 = vperm.slane %v1514_v4, %v2755_v44  ;;  %v1535_v29 = vpop.permute.xlu2 %1534 }
 0xb2e   :  { %v1502_v63 = vpop.permute.xlu0 %1501  ;;  %v1575_v30 = vperm.slane %v1535_v29, %v2758_v36  ;;  %v147_v29 = vld [vmem:[%s3470_s12 + $0x40] sm:$0xff] }
 0xb2f   :  { %v1557_v14 = vperm.slane %v1502_v63, %v2761_v34  ;;  %v1566_v9 = vsel %vm541_vm0, %v1565_v13, %v1564_v24  ;;  %v2106_v24 = vld [vmem:[%s3468_s8 + $0x20] sm:$0xff] }
 0xb30   :  { %v151_v13 = vld [vmem:[%s3470_s12 + $0x60] sm:$0xff] }
 0xb31   :  { %v1558_v2 = vsel %vm545_vm1, %v1557_v14, %v1556_v57  ;;  %v2103_v14 = vld [vmem:[%s3468_s8 + $0x38] sm:$0xff]  ;;  %v152_v57 = vld [vmem:[%s3470_s12 + $0x68] sm:$0xff] }
 0xb32   :  { %v1581_v52 = vsel %vm586_vm4, %v1558_v2, %v1580_v3  ;;  %v144_v3 = vld [vmem:[%s3470_s12 + $0x28] sm:$0xff] }
 0xb34   :  { %v1523_v20 = vpop.permute.xlu1 %1522 }
 0xb35   :  { %v1569_v32 = vperm.slane %v1523_v20, %v2755_v44 }
 0xb36   :  { %v1511_v45 = vpop.permute.xlu0 %1510 }
 0xb37   :  { %v1562_v53 = vperm.slane %v1511_v45, %v2761_v34  ;;  %v1571_v19 = vsel %vm541_vm0, %v1570_v41, %v1569_v32  ;;  %v2110_v32 = vld [vmem:[%s3468_s8] sm:$0xff] }
 0xb39   :  { %v1563_v5 = vsel %vm545_vm1, %v1562_v53, %v1561_v26  ;;  %v2107_v53 = vld [vmem:[%s3468_s8 + $0x18] sm:$0xff]  ;;  %v148_v26 = vld [vmem:[%s3470_s12 + $0x48] sm:$0xff] }
 0xb3a   :  { %v1582_v8 = vsel %vm588_vm5, %v1563_v5, %v1581_v52  ;;  %v145_v5 = vld [vmem:[%s3470_s12 + $0x30] sm:$0xff]  ;;  %v143_v52 = vld [vmem:[%s3470_s12 + $0x20] sm:$0xff] }
 0xb3c   :  { %v1532_v48 = vpop.permute.xlu1 %1531 }
 0xb3d   :  { %v1574_v7 = vperm.slane %v1532_v48, %v2755_v44  ;;  %v154_v48 = vld [vmem:[%s3470_s12 + $0x78] sm:$0xff] }
 0xb3e   :  { %v1520_v49 = vpop.permute.xlu0 %1519 }
 0xb3f   :  { %v1567_v54 = vperm.slane %v1520_v49, %v2761_v34  ;;  %v1576_v63 = vsel %vm541_vm0, %v1575_v30, %v1574_v7 }
 0xb41   :  { %v1568_v25 = vsel %vm545_vm1, %v1567_v54, %v1566_v9  ;;  %v153_v54 = vld [vmem:[%s3470_s12 + $0x70] sm:$0xff] }
 0xb42   :  { %v1583_v44 = vsel %vm590_vm6, %v1568_v25, %v1582_v8 }
 0xb46   :  { %v1529_v38 = vpop.permute.xlu0 %1528 }
 0xb47   :  { %v1572_v46 = vperm.slane %v1529_v38, %v2761_v34  ;;  %v2100_v38 = vld [vmem:[%s3468_s8 + $0x50] sm:$0xff] }
 0xb49   :  { %v1573_v51 = vsel %vm545_vm1, %v1572_v46, %v1571_v19 }
 0xb4a   :  { %v1584_v45 = vsel %vm592_vm7, %v1573_v51, %v1583_v44 }
 0xb4e   :  { %v1538_v1 = vpop.permute.xlu0 %1537 }
 0xb4f   :  { %v1577_v42 = vperm.slane %v1538_v1, %v2761_v34 }
 0xb51   :  { %v1578_v4 = vsel %vm545_vm1, %v1577_v42, %v1576_v63  ;;  %v142_v42 = vld [vmem:[%s3470_s12 + $0x18] sm:$0xff] }
 0xb52   :  { %v1585_v22 = vsel %vm594_vm8, %v1578_v4, %v1584_v45 }
 0xb53   :  { %v1587_v36 = vsel %vm2810_vm9, %v1585_v22, -1e+30 }
 0xb54   :  { %v1588_v49 = vsel %vm598_vm10, %v1587_v36, -inf }
 0xb55   :  { %1589 = vmax.xlane.f32.xlu1 %v1588_v49 }
 0xbc8   :  { %v1590_v20 = vpop.xlane.xlu1 %1589 }
 0xbc9   :  { %v1591_v59 = vsub.f32 %v1587_v36, %v1590_v20 }
 0xbcb   :  { %v1592_v15 = vmul.f32 1.442695, %v1591_v59 }
 0xbcd   :  { %2057 = vpow2.f32 %v1592_v15 }
 0xbd3   :  { %v2058_v34 = vpop.eup %2057 }
 0xbd4   :  { %v1594_v58 = vsel %vm2810_vm9, %v2058_v34, 0.0 }
 0xbd5   :  { %v1595_v18 = vsel %vm598_vm10, %v1594_v58, 0.0 }
 0xbd6   :  { %1596 = vadd.xlane.f32.xlu2 %v1595_v18  ;;  %v140_v18 = vld [vmem:[%s3470_s12 + $0x8] sm:$0xff] }
 0xc49   :  { %v1597_v31 = vpop.xlane.xlu2 %1596 }
 0xc4a   :  { %2059 = vrcp.f32 %v1597_v31  ;;  %v139_v31 = vld [vmem:[%s3470_s12] sm:$0xff] }
 0xc50   :  { %v2060_v23 = vpop.eup %2059 }
 0xc51   :  { %v1599_v37 = vmul.f32 %v2060_v23, %v1594_v58  ;;  %v141_v58 = vld [vmem:[%s3470_s12 + $0x10] sm:$0xff] }
 0xc53   :  { %1872 = vmatmul.msk.f32.vlgmr.msra.gmra.mxu3 %vm598_vm10, %v1599_v37  ;;  %v1601_v60 = vrot.slane %v1599_v37, 1  ;;  %v1602_v12 = vrot.slane %v1599_v37, 2  ;;  %v1603_v39 = vrot.slane %v1599_v37, 3  ;;  %v1607_v40 = vrot.slane %v1599_v37, 7 }
 0xc54   :  { %1755 = vmatpush.msra.mxu3 %v3628_v47  ;;  %v2096_v47 = vld [vmem:[%s3468_s8 + $0x70] sm:$0xff] }
 0xc55   :  { %1873 = vmatmul.msk.f32.vlgmr.msra.gmra.mxu1 %vm598_vm10, %v1601_v60  ;;  %1874 = vmatmul.msk.f32.vlgmr.msrb.gmra.mxu2 %vm598_vm10, %v1602_v12 }
 0xc56   :  { %1756 = vmatpush.msra.mxu3 %v3629_v33  ;;  %1777 = vmatpush.msra.mxu1 %v2549_v56  ;;  %v1604_v56 = vrot.slane %v1599_v37, 4  ;;  %v1605_v33 = vrot.slane %v1599_v37, 5 }
 0xc57   :  { %1807 = vmatpush.msrb.mxu2 %v2095_v27  ;;  %v1904_v27 = vld [vmem:[%s3471_s13] ss:$0 sm:$0xff] }
 0xc58   :  { %1757 = vmatpush.msra.mxu3 %v3630_v50  ;;  %1778 = vmatpush.msra.mxu1 %v2542_v43  ;;  %v2098_v43 = vld [vmem:[%s3468_s8 + $0x60] sm:$0xff]  ;;  %v1606_v50 = vrot.slane %v1599_v37, 6 }
 0xc59   :  { %1808 = vmatpush.msrb.mxu2 %v2096_v47  ;;  %v2111_v37 = vld [vmem:[%s3469_s9] ss:$0 sm:$0xff] }
 0xc5a   :  { %1779 = vmatpush.msra.mxu1 %v2527_v28  ;;  %v2099_v28 = vld [vmem:[%s3468_s8 + $0x58] sm:$0xff] }
 0xc5b   :  { %1875 = vmatmul.msk.f32.vlgmr.msrb.gmra.mxu3 %vm598_vm10, %v1603_v39  ;;  %1809 = vmatpush.msrb.mxu2 %v2097_v0 }
 0xc5c   :  { %1831 = vmatpush.msrb.mxu3 %v154_v48 }
 0xc5d   :  { %1876 = vmatmul.msk.f32.vlgmr.msrb.gmra.mxu1 %vm598_vm10, %v1604_v56  ;;  %1877 = vmatmul.msk.f32.vlgmr.msra.gmra.mxu2 %vm598_vm10, %v1605_v33 }
 0xc5e   :  { %1810 = vmatpush.msrb.mxu2 %v2098_v43  ;;  %1832 = vmatpush.msrb.mxu3 %v153_v54 }
 0xc60   :  { %1811 = vmatpush.msrb.mxu2 %v2099_v28  ;;  %1833 = vmatpush.msrb.mxu3 %v152_v57 }
 0xc62   :  { %1812 = vmatpush.msrb.mxu2 %v2100_v38  ;;  %1834 = vmatpush.msrb.mxu3 %v151_v13 }
 0xc63   :  { %1878 = vmatmul.msk.f32.vlgmr.msra.gmra.mxu3 %vm598_vm10, %v1606_v50 }
 0xc64   :  { %1813 = vmatpush.msrb.mxu2 %v2101_v55  ;;  %1835 = vmatpush.msrb.mxu3 %v150_v35 }
 0xc65   :  { %1879 = vmatmul.msk.f32.vlgmr.msra.gmra.mxu1 %vm598_vm10, %v1607_v40 }
 0xc66   :  { %1814 = vmatpush.msrb.mxu2 %v2102_v17  ;;  %1836 = vmatpush.msrb.mxu3 %v149_v61 }
 0xc68   :  { %1815 = vmatpush.msrb.mxu2 %v2103_v14  ;;  %1837 = vmatpush.msrb.mxu3 %v148_v26 }
 0xc6a   :  { %1816 = vmatpush.msrb.mxu2 %v2104_v11  ;;  %1838 = vmatpush.msrb.mxu3 %v147_v29 }
 0xc6c   :  { %1817 = vmatpush.msrb.mxu2 %v2105_v21  ;;  %1839 = vmatpush.msrb.mxu3 %v146_v62 }
 0xc6e   :  { %1818 = vmatpush.msrb.mxu2 %v2106_v24  ;;  %1840 = vmatpush.msrb.mxu3 %v145_v5 }
 0xc70   :  { %1819 = vmatpush.msrb.mxu2 %v2107_v53  ;;  %1841 = vmatpush.msrb.mxu3 %v144_v3 }
 0xc72   :  { %1820 = vmatpush.msrb.mxu2 %v2108_v16  ;;  %1842 = vmatpush.msrb.mxu3 %v143_v52 }
 0xc74   :  { %1821 = vmatpush.msrb.mxu2 %v2109_v6  ;;  %1843 = vmatpush.msrb.mxu3 %v142_v42 }
 0xc76   :  { %1822 = vmatpush.msrb.mxu2 %v2110_v32  ;;  %1844 = vmatpush.msrb.mxu3 %v141_v58 }
 0xc78   :  { %1845 = vmatpush.msrb.mxu3 %v140_v18 }
 0xc7a   :  { %1846 = vmatpush.msrb.mxu3 %v139_v31 }
 0xcd2   :  { %v1649_v46 = vpop.f32.mrf.mxu1 }
 0xcd3   :  { %v1792_v19 = vrot.slane %v1649_v46, 7 }
 0xcd6   :  { %v1627_v41 = vpop.f32.mrf.mxu3 }
 0xcd7   :  { %v1793_v51 = vsel %vm582_vm2, %v1792_v19, %v1627_v41 }
 0xcd8   :  { %v1671_v2 = vpop.f32.mrf.mxu2 }
 0xcd9   :  { %v1794_v7 = vrot.slane %v1671_v2, 6 }
 0xcda   :  { %v1715_v9 = vpop.f32.mrf.mxu1 }
 0xcdb   :  { %v1795_v1 = vsel %vm584_vm3, %v1794_v7, %v1793_v51  ;;  %v1798_v44 = vrot.slane %v1715_v9, 4 }
 0xcde   :  { %v1693_v25 = vpop.f32.mrf.mxu3 }
 0xcdf   :  { %v1796_v30 = vrot.slane %v1693_v25, 5 }
 0xce0   :  { %v1737_v8 = vpop.f32.mrf.mxu2 }
 0xce1   :  { %v1797_v63 = vsel %vm586_vm4, %v1796_v30, %v1795_v1  ;;  %v1800_v4 = vrot.slane %v1737_v8, 3 }
 0xce2   :  { %v1799_v45 = vsel %vm588_vm5, %v1798_v44, %v1797_v63  ;;  %v1781_v22 = vpop.f32.mrf.mxu1 }
 0xce3   :  { %v1801_v20 = vsel %vm590_vm6, %v1800_v4, %v1799_v45  ;;  %v1804_v59 = vrot.slane %v1781_v22, 1 }
 0xce6   :  { %v1759_v36 = vpop.f32.mrf.mxu3 }
 0xce7   :  { %v1802_v49 = vrot.slane %v1759_v36, 2 }
 0xce9   :  { %v1803_v15 = vsel %vm592_vm7, %v1802_v49, %v1801_v20 }
 0xcea   :  { %v1805_v34 = vsel %vm594_vm8, %v1804_v59, %v1803_v15 }
 0xceb   :  { %1823 = vmatmul.f32.vlgmr.msrb.gmra.mxu2 %v1805_v34 }
 0xd6e   :  { %v1824_v23 = vpop.f32.mrf.mxu2 }
 0xd6f   :  { %v1825_v60 = vadd.f32 %v2111_v37, %v1824_v23 }
 0xd71   :  { %v1827_v12 = vadd.f32 %v1825_v60, %v3234_v10 }
 0xd73   :  { %1847 = vmatmul.f32.vlgmr.msrb.gmra.mxu3 %v1827_v12 }
 0xdf6   :  { %v1848_v39 = vpop.f32.mrf.mxu3 }
 0xdf7   :  { %v1849_v47 = vadd.f32 %v1904_v27, %v1848_v39 }
 0xdf9   :  { %1851 = vst [vmem:[%s3472_s14] sm:$0xff] %v1849_v47 }

</bundles_post_ra>
